<compile_context>
chip_gen: v7x
topology: tpu7x:2x2x1
jax: 0.10.0
libtpu: 0.0.40
codegen_flags: <defaults>
</compile_context>

<pallas_src>
import jax
import jax.numpy as jnp
from jax import lax
from jax.experimental import pallas as pl
from jax.experimental.pallas import tpu as pltpu

LANES = 128                # lane width (minor dim)
SUBLANES = 8               # sublanes per vreg
TM = 1024                  # rows per grid step -> 512 KiB f32 block per operand
CHUNK = TM * LANES         # elements per grid step (per operand)


def _l1_partial_kernel(a_ref, b_ref, out_ref):
    """One grid step: (TM, 128) tile -> (8, 128) per-lane partial sum of |a-b|.

    The (TM//8, 8, 128) reshape keeps the native (8,128) vreg tile as the minor
    dims, so the axis-0 sum is plain VPU vreg adds (no XLU, no scalar dep across
    grid steps).  The final (8,128)->scalar reduce happens outside the kernel.
    """
    a = a_ref[...].astype(jnp.float32)
    b = b_ref[...].astype(jnp.float32)
    diff = jnp.abs(a - b)
    out_ref[...] = jnp.sum(diff.reshape(TM // SUBLANES, SUBLANES, LANES), axis=0)


def _concat_chunk_aligned(tensors, dtype):
    """Flatten each tensor, zero-pad it to a CHUNK boundary, concatenate all.

    Zero padding on both operands contributes |0-0| = 0 to the per-pair sums,
    and CHUNK alignment guarantees no (TM,128) tile ever spans two pairs.
    Returns (flat array of length num_tiles*CHUNK, per-pair tile counts).
    """
    parts = []
    tiles = []
    for t in tensors:
        flat = t.reshape(-1).astype(dtype)          # free for matching dtype
        n = flat.shape[0]                           # static Python int
        n_tiles = -(-n // CHUNK)                    # ceil div
        pad = n_tiles * CHUNK - n
        parts.append(flat)
        if pad:
            parts.append(jnp.zeros((pad,), dtype))
        tiles.append(n_tiles)
    return jnp.concatenate(parts), tiles


def _fused_pair_l1_means(inputs, targets):
    """Per-pair mean(|inp - tgt|) for the whole feature pyramid, one launch."""
    a_dtype = jnp.result_type(*[x.dtype for x in inputs])
    b_dtype = jnp.result_type(*[x.dtype for x in targets])
    a_flat, tiles_per_pair = _concat_chunk_aligned(inputs, a_dtype)
    b_flat, tiles_b = _concat_chunk_aligned(targets, b_dtype)
    assert tiles_per_pair == tiles_b, "input/target feature shapes must match"
    num_tiles = sum(tiles_per_pair)

    a2 = a_flat.reshape(num_tiles * TM, LANES)
    b2 = b_flat.reshape(num_tiles * TM, LANES)

    partials = pl.pallas_call(
        _l1_partial_kernel,
        out_shape=jax.ShapeDtypeStruct((num_tiles * SUBLANES, LANES), jnp.float32),
        grid_spec=pltpu.PrefetchScalarGridSpec(
            num_scalar_prefetch=0,
            grid=(num_tiles,),
            in_specs=[
                pl.BlockSpec((TM, LANES), lambda i: (i, 0)),
                pl.BlockSpec((TM, LANES), lambda i: (i, 0)),
            ],
            out_specs=pl.BlockSpec((SUBLANES, LANES), lambda i: (i, 0)),
        ),
        compiler_params=pltpu.CompilerParams(
            # every tile writes its own output block -> fully parallel;
            # v7x megacore shards the grid across both TensorCores.
            dimension_semantics=("parallel",),
        ),
    )(a2, b2)

    # Tiny finishing reduction in plain JAX: per-tile scalar, then a static
    # segmented sum per pair (tile counts are static Python ints).
    per_tile = partials.reshape(num_tiles, SUBLANES * LANES).sum(axis=-1)
    means = []
    off = 0
    for n_tiles, inp in zip(tiles_per_pair, inputs):
        pair_sum = per_tile[off:off + n_tiles].sum()
        means.append(pair_sum / jnp.float32(inp.size))   # true (unpadded) count
        off += n_tiles
    return means


# TODO(synk): pl.pallas_call is not auto-differentiable; for generator training,
# wrap _fused_pair_l1_means in jax.custom_vjp with bwd = sign(a - b) / n * g
# (targets are stop_gradient'ed, so only the input cotangent is needed).
def _fm_loss(inputs, targets, fm_weight):
    targets = [lax.stop_gradient(t) for t in targets]    # == target.detach()
    means = _fused_pair_l1_means(inputs, targets)
    total = means[0]
    for m in means[1:]:
        total = total + m
    return total / jnp.float32(len(inputs)) * fm_weight


_fm_loss_jit = jax.jit(_fm_loss)


class Criterion:
    """JAX/Pallas port of the PyTorch feature-matching Criterion (forward pass)."""

    def __init__(self, fm_weight):
        self.fm_weight = fm_weight

    def fm_crit(self, inputs, targets):
        return _fm_loss_jit(list(inputs), list(targets), jnp.float32(self.fm_weight))

    def forward(self, data_dict):
        fake_feats = data_dict["fake_features"]
        real_feats = data_dict["real_features"]
        loss_G_dict = {}
        loss_G_dict["feature_matching"] = self.fm_crit(fake_feats, real_feats)
        return loss_G_dict

    __call__ = forward


if __name__ == "__main__":
    key = jax.random.PRNGKey(0)

    # Small multi-scale feature pyramids (as a discriminator would emit, NCHW).
    # The last shape is deliberately not a multiple of 128 elements to exercise
    # the chunk-alignment zero-padding path.
    feat_shapes = [(2, 4, 16, 16), (2, 8, 8, 8), (2, 16, 4, 4), (2, 3, 7, 5)]
    fake_feats, real_feats = [], []
    for shp in feat_shapes:
        key, k1, k2 = jax.random.split(key, 3)
        fake_feats.append(jax.random.normal(k1, shp, dtype=jnp.float32))
        real_feats.append(jax.random.normal(k2, shp, dtype=jnp.float32))

    criterion = Criterion(fm_weight=10.0)
    out = criterion({"fake_features": fake_feats, "real_features": real_feats})
    loss = jax.block_until_ready(out["feature_matching"])

    # Pure-JAX reference check (matches F.l1_loss reduction='mean' semantics).
    ref = sum(
        jnp.mean(jnp.abs(f - r)) for f, r in zip(fake_feats, real_feats)
    ) / len(fake_feats) * 10.0

    assert jnp.allclose(loss, ref, rtol=1e-5, atol=1e-5), (loss, ref)
    print("KERNEL_OK")
</pallas_src>

<mosaic_0001>
module attributes {stable_mosaic.version = 11 : i64} {
  func.func @_l1_partial_kernel(%arg0: i32, %arg1: memref<1024x128xf32, #tpu.memory_space<vmem>>, %arg2: memref<1024x128xf32, #tpu.memory_space<vmem>>, %arg3: memref<8x128xf32, #tpu.memory_space<vmem>>) attributes {dimension_semantics = [#tpu.dimension_semantics<parallel>], iteration_bounds = array<i64: 4>, scalar_prefetch = 0 : i64, scratch_operands = 0 : i64, tpu.core_type = #tpu.core_type<tc>, window_params = [{transform_indices = @transform_0, window_bounds = array<i64: 1024, 128>}, {transform_indices = @transform_1, window_bounds = array<i64: 1024, 128>}, {transform_indices = @transform_2, window_bounds = array<i64: 8, 128>}]} {
    %c0 = arith.constant 0 : index
    %c0_0 = arith.constant 0 : index
    %0 = vector.load %arg1[%c0, %c0_0] : memref<1024x128xf32, #tpu.memory_space<vmem>>, vector<1024x128xf32>
    %c0_1 = arith.constant 0 : index
    %c0_2 = arith.constant 0 : index
    %1 = vector.load %arg2[%c0_1, %c0_2] : memref<1024x128xf32, #tpu.memory_space<vmem>>, vector<1024x128xf32>
    %2 = arith.subf %0, %1 : vector<1024x128xf32>
    %3 = math.absf %2 : vector<1024x128xf32>
    %4 = vector.shape_cast %3 : vector<1024x128xf32> to vector<128x8x128xf32>
    %cst = arith.constant dense<0.000000e+00> : vector<8x128xf32>
    %5 = vector.multi_reduction <add>, %4, %cst [0] : vector<128x8x128xf32> to vector<8x128xf32>
    %c0_3 = arith.constant 0 : index
    %c0_4 = arith.constant 0 : index
    %6 = vector.load %arg3[%c0_3, %c0_4] : memref<8x128xf32, #tpu.memory_space<vmem>>, vector<8x128xf32>
    tpu.vector_store %arg3[%c0_3, %c0_4], %5 {strides = array<i32>} : memref<8x128xf32, #tpu.memory_space<vmem>>, vector<8x128xf32>,
    return
  }
  func.func @transform_0(%arg0: i32) -> (i32, i32) {
    %c0_i32 = arith.constant 0 : i32
    %c0_i32_0 = arith.constant 0 : i32
    return %arg0, %c0_i32 : i32, i32
  }
  func.func @transform_1(%arg0: i32) -> (i32, i32) {
    %c0_i32 = arith.constant 0 : i32
    %c0_i32_0 = arith.constant 0 : i32
    return %arg0, %c0_i32 : i32, i32
  }
  func.func @transform_2(%arg0: i32) -> (i32, i32) {
    %c0_i32 = arith.constant 0 : i32
    %c0_i32_0 = arith.constant 0 : i32
    return %arg0, %c0_i32 : i32, i32
  }
}

</mosaic_0001>

<bundles_post_ra>
// kernel: _fm_loss.1
= control target key start
LH: loop header
LB: loop body
LE: loop exit
PB: predicated region body
PF: predicated region fallthrough
CT: control target
= control target key end

     0   :  { %s914_s9 = smov 0   ;;  %s2084_s0 = inlined_call_operand.vmem [shape: f32[4096,128], index: 0, kind: input, shape index: {}]   ;;  %s2085_s1 = inlined_call_operand.vmem [shape: f32[4096,128], index: 1, kind: input, shape index: {}]   ;;  %s2086_s2 = inlined_call_operand.vmem [shape: f32[32,128], index: 2, kind: output, shape index: {}]  }
   0x1 LB: > { %s920_s10 = sadd.s32 4294967295, %s897_s9   ;;  %p875_p0 = scmp.ge.s32.totalorder %s897_s9, 1  ;;  %s897_s9 = sphi %s914_s9, %s12_s9  }
   0x2   : > { %p124_p1 = scmp.lt.s32.totalorder %s897_s9, 5 }
   0x4   : > { %p125_p2 = pnand %p875_p0, %p124_p1 }
   0x6   : > { %128 = sbr.rel (%p125_p2) target bundleno = 363 (0x16b), region = 28 }
   0xd   : > { %s876_s11 = sshll.u32 %s920_s10, 7  ;;  %p162_p4 = scmp.lt.s32.totalorder %s920_s10, 3 }
   0xe   : > { %p151_p3 = scmp.lt.s32.totalorder %s876_s11, 511 }
   0xf   : > { %s2650_s10 = smov (!%p162_p4, %s920_s10), 3 }
  0x10   : > { %s2648_s11 = smov (!%p151_p3, %s876_s11), 511  ;;  %s880_s19 = sshll.u32 %s2650_s10, 3 }
  0x11   : > { %s877_s12 = sshll.u32 %s2648_s11, 3  ;;  %s165_s22 = scalar_lea.vmem %s2086_s2, %s880_s19 }
  0x12   : > { %s928_s15 = scalar_lea.vmem %s2084_s0, %s877_s12  ;;  %s954_s18 = scalar_lea.vmem %s2085_s1, %s877_s12 }
  0x13   : > { %v931_v0 = vld [vmem:[%s928_s15 + $0x108] sm:$0xff]  ;;  %v934_v1 = vld [vmem:[%s928_s15 + $0x110] sm:$0xff]  ;;  %v937_v2 = vld [vmem:[%s928_s15 + $0x118] sm:$0xff] }
  0x14   : > { %v940_v3 = vld [vmem:[%s928_s15 + $0x120] sm:$0xff]  ;;  %v943_v4 = vld [vmem:[%s928_s15 + $0x128] sm:$0xff]  ;;  %v946_v5 = vld [vmem:[%s928_s15 + $0x130] sm:$0xff] }
  0x15   : > { %v949_v6 = vld [vmem:[%s928_s15 + $0x138] sm:$0xff]  ;;  %v957_v7 = vld [vmem:[%s928_s15 + $0x140] sm:$0xff]  ;;  %v960_v8 = vld [vmem:[%s928_s15 + $0x148] sm:$0xff] }
  0x16   : > { %v963_v9 = vld [vmem:[%s928_s15 + $0x150] sm:$0xff]  ;;  %v966_v10 = vld [vmem:[%s928_s15 + $0x158] sm:$0xff]  ;;  %v969_v11 = vld [vmem:[%s928_s15 + $0x160] sm:$0xff] }
  0x17   : > { %v972_v12 = vld [vmem:[%s928_s15 + $0x168] sm:$0xff]  ;;  %v978_v14 = vld [vmem:[%s928_s15 + $0x170] sm:$0xff]  ;;  %v981_v15 = vld [vmem:[%s928_s15 + $0x178] sm:$0xff] }
  0x18   : > { %2242 = vst [vmem:[#allocation2_spill] sm:$0xff] %v972_v12  ;;  %v975_v13 = vld [vmem:[%s954_s18 + $0x108] sm:$0xff]  ;;  %2243 = vst [vmem:[#allocation3_spill] sm:$0xff] %v978_v14  ;;  %v984_v16 = vld [vmem:[%s928_s15 + $0x180] sm:$0xff] }
  0x19   : > { %2244 = vst [vmem:[#allocation4_spill] sm:$0xff] %v981_v15  ;;  %2245 = vst [vmem:[#allocation5_spill] sm:$0xff] %v984_v16  ;;  %v987_v17 = vld [vmem:[%s954_s18 + $0x110] sm:$0xff]  ;;  %v990_v18 = vld [vmem:[%s954_s18 + $0x118] sm:$0xff] }
  0x1a   : > { %v993_v19 = vld [vmem:[%s954_s18 + $0x120] sm:$0xff]  ;;  %v998_v21 = vld [vmem:[%s928_s15 + $0x188] sm:$0xff]  ;;  %v1001_v22 = vld [vmem:[%s928_s15 + $0x190] sm:$0xff] }
  0x1b   : > { %2246 = vst [vmem:[#allocation6_spill] sm:$0xff] %v998_v21  ;;  %2247 = vst [vmem:[#allocation7_spill] sm:$0xff] %v1001_v22  ;;  %v1004_v23 = vld [vmem:[%s928_s15 + $0x198] sm:$0xff]  ;;  %v1007_v24 = vld [vmem:[%s954_s18 + $0x128] sm:$0xff] }
  0x1c   : > { %2248 = vst [vmem:[#allocation8_spill] sm:$0xff] %v1004_v23  ;;  %v1010_v25 = vld [vmem:[%s954_s18 + $0x130] sm:$0xff]  ;;  %v1013_v26 = vld [vmem:[%s954_s18 + $0x138] sm:$0xff]  ;;  %v1022_v30 = vld [vmem:[%s928_s15 + $0x1a0] sm:$0xff] }
  0x1d   : > { %2249 = vst [vmem:[#allocation9_spill] sm:$0xff] %v1022_v30  ;;  %v1025_v31 = vld [vmem:[%s928_s15 + $0x1a8] sm:$0xff]  ;;  %v1028_v32 = vld [vmem:[%s928_s15 + $0x1b0] sm:$0xff]  ;;  %v1031_v33 = vld [vmem:[%s954_s18 + $0x140] sm:$0xff] }
  0x1e   : > { %2250 = vst [vmem:[#allocation10_spill] sm:$0xff] %v1025_v31  ;;  %2251 = vst [vmem:[#allocation11_spill] sm:$0xff] %v1028_v32  ;;  %v1034_v34 = vld [vmem:[%s954_s18 + $0x148] sm:$0xff]  ;;  %v1037_v35 = vld [vmem:[%s954_s18 + $0x150] sm:$0xff] }
  0x1f   : > { %v1046_v39 = vld [vmem:[%s928_s15 + $0x1b8] sm:$0xff]  ;;  %v1049_v40 = vld [vmem:[%s928_s15 + $0x1c0] sm:$0xff]  ;;  %v1052_v41 = vld [vmem:[%s928_s15 + $0x1c8] sm:$0xff] }
  0x20   : > { %2252 = vst [vmem:[#allocation12_spill] sm:$0xff] %v1046_v39  ;;  %2253 = vst [vmem:[#allocation13_spill] sm:$0xff] %v1049_v40  ;;  %v1055_v42 = vld [vmem:[%s954_s18 + $0x158] sm:$0xff]  ;;  %v1058_v43 = vld [vmem:[%s954_s18 + $0x160] sm:$0xff] }
  0x21   : > { %2254 = vst [vmem:[#allocation14_spill] sm:$0xff] %v1052_v41  ;;  %2255 = vst [vmem:[#allocation15_spill] sm:$0xff] %v1058_v43  ;;  %v1061_v44 = vld [vmem:[%s954_s18 + $0x168] sm:$0xff]  ;;  %v1070_v48 = vld [vmem:[%s928_s15 + $0x1d0] sm:$0xff] }
  0x22   : > { %2256 = vst [vmem:[#allocation16_spill] sm:$0xff] %v1061_v44  ;;  %2257 = vst [vmem:[#allocation17_spill] sm:$0xff] %v1070_v48  ;;  %v1073_v49 = vld [vmem:[%s928_s15 + $0x1d8] sm:$0xff]  ;;  %v1076_v50 = vld [vmem:[%s928_s15 + $0x1e0] sm:$0xff] }
  0x23   : > { %2258 = vst [vmem:[#allocation18_spill] sm:$0xff] %v1073_v49  ;;  %2259 = vst [vmem:[#allocation19_spill] sm:$0xff] %v1076_v50  ;;  %v1079_v51 = vld [vmem:[%s954_s18 + $0x170] sm:$0xff]  ;;  %v1082_v52 = vld [vmem:[%s954_s18 + $0x178] sm:$0xff] }
  0x24   : > { %2260 = vst [vmem:[#allocation20_spill] sm:$0xff] %v1079_v51  ;;  %2261 = vst [vmem:[#allocation21_spill] sm:$0xff] %v1082_v52  ;;  %v1085_v53 = vld [vmem:[%s954_s18 + $0x180] sm:$0xff]  ;;  %v1094_v57 = vld [vmem:[%s928_s15 + $0x1e8] sm:$0xff] }
  0x25   : > { %2262 = vst [vmem:[#allocation22_spill] sm:$0xff] %v1085_v53  ;;  %2263 = vst [vmem:[#allocation23_spill] sm:$0xff] %v1094_v57  ;;  %v1097_v58 = vld [vmem:[%s928_s15 + $0x1f0] sm:$0xff]  ;;  %v1100_v59 = vld [vmem:[%s928_s15 + $0x1f8] sm:$0xff] }
  0x26   : > { %2264 = vst [vmem:[#allocation24_spill] sm:$0xff] %v1097_v58  ;;  %2265 = vst [vmem:[#allocation25_spill] sm:$0xff] %v1100_v59  ;;  %v1103_v60 = vld [vmem:[%s954_s18 + $0x188] sm:$0xff]  ;;  %v1106_v61 = vld [vmem:[%s954_s18 + $0x190] sm:$0xff] }
  0x27   : > { %2266 = vst [vmem:[#allocation26_spill] sm:$0xff] %v1103_v60  ;;  %2267 = vst [vmem:[#allocation27_spill] sm:$0xff] %v1106_v61  ;;  %v1109_v62 = vld [vmem:[%s954_s18 + $0x198] sm:$0xff]  ;;  %v1118_v54 = vld [vmem:[%s928_s15 + $0x200] sm:$0xff] }
  0x28   : > { %2268 = vst [vmem:[#allocation28_spill] sm:$0xff] %v1109_v62  ;;  %2269 = vst [vmem:[#allocation29_spill] sm:$0xff] %v1118_v54  ;;  %v1121_v47 = vld [vmem:[%s928_s15 + $0x208] sm:$0xff]  ;;  %v1124_v46 = vld [vmem:[%s928_s15 + $0x210] sm:$0xff] }
  0x29   : > { %2270 = vst [vmem:[#allocation30_spill] sm:$0xff] %v1121_v47  ;;  %2271 = vst [vmem:[#allocation31_spill] sm:$0xff] %v1124_v46  ;;  %v1127_v45 = vld [vmem:[%s954_s18 + $0x1a0] sm:$0xff]  ;;  %v1130_v38 = vld [vmem:[%s954_s18 + $0x1a8] sm:$0xff] }
  0x2a   : > { %2272 = vst [vmem:[#allocation32_spill] sm:$0xff] %v1127_v45  ;;  %2273 = vst [vmem:[#allocation33_spill] sm:$0xff] %v1130_v38  ;;  %v1133_v63 = vld [vmem:[%s954_s18 + $0x1b0] sm:$0xff]  ;;  %v1142_v36 = vld [vmem:[%s928_s15 + $0x218] sm:$0xff] }
  0x2b   : > { %2274 = vst [vmem:[#allocation34_spill] sm:$0xff] %v1133_v63  ;;  %2275 = vst [vmem:[#allocation35_spill] sm:$0xff] %v1142_v36  ;;  %v1145_v29 = vld [vmem:[%s928_s15 + $0x220] sm:$0xff]  ;;  %v1148_v28 = vld [vmem:[%s928_s15 + $0x228] sm:$0xff] }
  0x2c   : > { %2276 = vst [vmem:[#allocation36_spill] sm:$0xff] %v1145_v29  ;;  %2277 = vst [vmem:[#allocation37_spill] sm:$0xff] %v1148_v28  ;;  %v1151_v27 = vld [vmem:[%s954_s18 + $0x1b8] sm:$0xff]  ;;  %v1154_v20 = vld [vmem:[%s954_s18 + $0x1c0] sm:$0xff] }
  0x2d   : > { %2278 = vst [vmem:[#allocation38_spill] sm:$0xff] %v1151_v27  ;;  %2279 = vst [vmem:[#allocation39_spill] sm:$0xff] %v1154_v20  ;;  %v1157_v56 = vld [vmem:[%s954_s18 + $0x1c8] sm:$0xff]  ;;  %v1166_v23 = vld [vmem:[%s928_s15 + $0x230] sm:$0xff] }
  0x2e   : > { %2280 = vst [vmem:[#allocation40_spill] sm:$0xff] %v1157_v56  ;;  %2281 = vst [vmem:[#allocation41_spill] sm:$0xff] %v1166_v23  ;;  %v1169_v61 = vld [vmem:[%s928_s15 + $0x238] sm:$0xff]  ;;  %v1172_v22 = vld [vmem:[%s928_s15 + $0x240] sm:$0xff] }
  0x2f   : > { %2282 = vst [vmem:[#allocation42_spill] sm:$0xff] %v1169_v61  ;;  %2283 = vst [vmem:[#allocation43_spill] sm:$0xff] %v1172_v22  ;;  %v1175_v60 = vld [vmem:[%s954_s18 + $0x1d0] sm:$0xff]  ;;  %v1178_v21 = vld [vmem:[%s954_s18 + $0x1d8] sm:$0xff] }
  0x30   : > { %2284 = vst [vmem:[#allocation44_spill] sm:$0xff] %v1175_v60  ;;  %2285 = vst [vmem:[#allocation45_spill] sm:$0xff] %v1178_v21  ;;  %v1181_v55 = vld [vmem:[%s954_s18 + $0x1e0] sm:$0xff]  ;;  %v1190_v32 = vld [vmem:[%s928_s15 + $0x248] sm:$0xff] }
  0x31   : > { %2286 = vst [vmem:[#allocation46_spill] sm:$0xff] %v1181_v55  ;;  %2287 = vst [vmem:[#allocation47_spill] sm:$0xff] %v1190_v32  ;;  %v1193_v38 = vld [vmem:[%s928_s15 + $0x250] sm:$0xff]  ;;  %v1196_v31 = vld [vmem:[%s928_s15 + $0x258] sm:$0xff] }
  0x32   : > { %2288 = vst [vmem:[#allocation48_spill] sm:$0xff] %v1193_v38  ;;  %2289 = vst [vmem:[#allocation49_spill] sm:$0xff] %v1196_v31  ;;  %v1199_v45 = vld [vmem:[%s954_s18 + $0x1e8] sm:$0xff]  ;;  %v1202_v30 = vld [vmem:[%s954_s18 + $0x1f0] sm:$0xff] }
  0x33   : > { %2290 = vst [vmem:[#allocation50_spill] sm:$0xff] %v1199_v45  ;;  %2291 = vst [vmem:[#allocation51_spill] sm:$0xff] %v1202_v30  ;;  %v1205_v37 = vld [vmem:[%s954_s18 + $0x1f8] sm:$0xff]  ;;  %v1214_v41 = vld [vmem:[%s928_s15 + $0x260] sm:$0xff] }
  0x34   : > { %2292 = vst [vmem:[#allocation52_spill] sm:$0xff] %v1205_v37  ;;  %2293 = vst [vmem:[#allocation53_spill] sm:$0xff] %v1214_v41  ;;  %v1217_v20 = vld [vmem:[%s928_s15 + $0x268] sm:$0xff]  ;;  %v1220_v40 = vld [vmem:[%s928_s15 + $0x270] sm:$0xff] }
  0x35   : > { %2294 = vst [vmem:[#allocation54_spill] sm:$0xff] %v1217_v20  ;;  %2295 = vst [vmem:[#allocation55_spill] sm:$0xff] %v1220_v40  ;;  %v1223_v27 = vld [vmem:[%s954_s18 + $0x200] sm:$0xff]  ;;  %v1226_v39 = vld [vmem:[%s954_s18 + $0x208] sm:$0xff] }
  0x36   : > { %2296 = vst [vmem:[#allocation56_spill] sm:$0xff] %v1223_v27  ;;  %2297 = vst [vmem:[#allocation57_spill] sm:$0xff] %v1226_v39  ;;  %v1229_v62 = vld [vmem:[%s954_s18 + $0x210] sm:$0xff]  ;;  %v1238_v50 = vld [vmem:[%s928_s15 + $0x278] sm:$0xff] }
  0x37   : > { %2298 = vst [vmem:[#allocation58_spill] sm:$0xff] %v1229_v62  ;;  %2299 = vst [vmem:[#allocation59_spill] sm:$0xff] %v1238_v50  ;;  %v1241_v21 = vld [vmem:[%s928_s15 + $0x280] sm:$0xff]  ;;  %v1244_v49 = vld [vmem:[%s928_s15 + $0x288] sm:$0xff] }
  0x38   : > { %2300 = vst [vmem:[#allocation60_spill] sm:$0xff] %v1241_v21  ;;  %2301 = vst [vmem:[#allocation61_spill] sm:$0xff] %v1244_v49  ;;  %v1247_v60 = vld [vmem:[%s954_s18 + $0x218] sm:$0xff]  ;;  %v1250_v48 = vld [vmem:[%s954_s18 + $0x220] sm:$0xff] }
  0x39   : > { %2302 = vst [vmem:[#allocation62_spill] sm:$0xff] %v1247_v60  ;;  %2303 = vst [vmem:[#allocation63_spill] sm:$0xff] %v1250_v48  ;;  %v1253_v63 = vld [vmem:[%s954_s18 + $0x228] sm:$0xff]  ;;  %v1262_v59 = vld [vmem:[%s928_s15 + $0x290] sm:$0xff] }
  0x3a   : > { %2304 = vst [vmem:[#allocation64_spill] sm:$0xff] %v1253_v63  ;;  %2305 = vst [vmem:[#allocation65_spill] sm:$0xff] %v1262_v59  ;;  %v1265_v30 = vld [vmem:[%s928_s15 + $0x298] sm:$0xff]  ;;  %v1268_v58 = vld [vmem:[%s928_s15 + $0x2a0] sm:$0xff] }
  0x3b   : > { %2306 = vst [vmem:[#allocation66_spill] sm:$0xff] %v1265_v30  ;;  %2307 = vst [vmem:[#allocation67_spill] sm:$0xff] %v1268_v58  ;;  %v1271_v45 = vld [vmem:[%s954_s18 + $0x230] sm:$0xff]  ;;  %v1274_v57 = vld [vmem:[%s954_s18 + $0x238] sm:$0xff] }
  0x3c   : > { %2308 = vst [vmem:[#allocation68_spill] sm:$0xff] %v1271_v45  ;;  %2309 = vst [vmem:[#allocation69_spill] sm:$0xff] %v1274_v57  ;;  %v1277_v56 = vld [vmem:[%s954_s18 + $0x240] sm:$0xff]  ;;  %v1286_v46 = vld [vmem:[%s928_s15 + $0x2a8] sm:$0xff] }
  0x3d   : > { %2310 = vst [vmem:[#allocation70_spill] sm:$0xff] %v1277_v56  ;;  %2311 = vst [vmem:[#allocation71_spill] sm:$0xff] %v1286_v46  ;;  %v1289_v39 = vld [vmem:[%s928_s15 + $0x2b0] sm:$0xff]  ;;  %v1292_v47 = vld [vmem:[%s928_s15 + $0x2b8] sm:$0xff] }
  0x3e   : > { %2312 = vst [vmem:[#allocation72_spill] sm:$0xff] %v1289_v39  ;;  %2313 = vst [vmem:[#allocation73_spill] sm:$0xff] %v1292_v47  ;;  %v1295_v27 = vld [vmem:[%s954_s18 + $0x248] sm:$0xff]  ;;  %v1298_v54 = vld [vmem:[%s954_s18 + $0x250] sm:$0xff] }
  0x3f   : > { %2314 = vst [vmem:[#allocation74_spill] sm:$0xff] %v1295_v27  ;;  %2315 = vst [vmem:[#allocation75_spill] sm:$0xff] %v1298_v54  ;;  %v1301_v55 = vld [vmem:[%s954_s18 + $0x258] sm:$0xff]  ;;  %v1310_v28 = vld [vmem:[%s928_s15 + $0x2c0] sm:$0xff] }
  0x40   : > { %2316 = vst [vmem:[#allocation76_spill] sm:$0xff] %v1301_v55  ;;  %2317 = vst [vmem:[#allocation77_spill] sm:$0xff] %v1310_v28  ;;  %v1313_v48 = vld [vmem:[%s928_s15 + $0x2c8] sm:$0xff]  ;;  %v1316_v29 = vld [vmem:[%s928_s15 + $0x2d0] sm:$0xff] }
  0x41   : > { %2318 = vst [vmem:[#allocation78_spill] sm:$0xff] %v1313_v48  ;;  %2319 = vst [vmem:[#allocation79_spill] sm:$0xff] %v1316_v29  ;;  %v1319_v60 = vld [vmem:[%s954_s18 + $0x260] sm:$0xff]  ;;  %v1322_v36 = vld [vmem:[%s954_s18 + $0x268] sm:$0xff] }
  0x42   : > { %2320 = vst [vmem:[#allocation80_spill] sm:$0xff] %v1319_v60  ;;  %2321 = vst [vmem:[#allocation81_spill] sm:$0xff] %v1322_v36  ;;  %v1325_v37 = vld [vmem:[%s954_s18 + $0x270] sm:$0xff]  ;;  %v1334_v22 = vld [vmem:[%s928_s15 + $0x2d8] sm:$0xff] }
  0x43   : > { %2322 = vst [vmem:[#allocation82_spill] sm:$0xff] %v1325_v37  ;;  %2323 = vst [vmem:[#allocation83_spill] sm:$0xff] %v1334_v22  ;;  %v1337_v57 = vld [vmem:[%s928_s15 + $0x2e0] sm:$0xff]  ;;  %v1340_v61 = vld [vmem:[%s928_s15 + $0x2e8] sm:$0xff] }
  0x44   : > { %2324 = vst [vmem:[#allocation84_spill] sm:$0xff] %v1337_v57  ;;  %2325 = vst [vmem:[#allocation85_spill] sm:$0xff] %v1340_v61  ;;  %v1343_v45 = vld [vmem:[%s954_s18 + $0x278] sm:$0xff]  ;;  %v1346_v23 = vld [vmem:[%s954_s18 + $0x280] sm:$0xff] }
  0x45   : > { %2326 = vst [vmem:[#allocation86_spill] sm:$0xff] %v1343_v45  ;;  %2327 = vst [vmem:[#allocation87_spill] sm:$0xff] %v1346_v23  ;;  %v1349_v62 = vld [vmem:[%s954_s18 + $0x288] sm:$0xff]  ;;  %v1358_v31 = vld [vmem:[%s928_s15 + $0x2f0] sm:$0xff] }
  0x46   : > { %2328 = vst [vmem:[#allocation88_spill] sm:$0xff] %v1349_v62  ;;  %2329 = vst [vmem:[#allocation89_spill] sm:$0xff] %v1358_v31  ;;  %v1361_v54 = vld [vmem:[%s928_s15 + $0x2f8] sm:$0xff]  ;;  %v1364_v38 = vld [vmem:[%s928_s15 + $0x300] sm:$0xff] }
  0x47   : > { %2330 = vst [vmem:[#allocation90_spill] sm:$0xff] %v1361_v54  ;;  %2331 = vst [vmem:[#allocation91_spill] sm:$0xff] %v1364_v38  ;;  %v1367_v27 = vld [vmem:[%s954_s18 + $0x290] sm:$0xff]  ;;  %v1370_v32 = vld [vmem:[%s954_s18 + $0x298] sm:$0xff] }
  0x48   : > { %2332 = vst [vmem:[#allocation92_spill] sm:$0xff] %v1367_v27  ;;  %2333 = vst [vmem:[#allocation93_spill] sm:$0xff] %v1370_v32  ;;  %v1373_v63 = vld [vmem:[%s954_s18 + $0x2a0] sm:$0xff]  ;;  %v1382_v40 = vld [vmem:[%s928_s15 + $0x308] sm:$0xff] }
  0x49   : > { %2334 = vst [vmem:[#allocation94_spill] sm:$0xff] %v1373_v63  ;;  %2335 = vst [vmem:[#allocation95_spill] sm:$0xff] %v1382_v40  ;;  %v1385_v36 = vld [vmem:[%s928_s15 + $0x310] sm:$0xff]  ;;  %v1388_v20 = vld [vmem:[%s928_s15 + $0x318] sm:$0xff] }
  0x4a   : > { %2336 = vst [vmem:[#allocation96_spill] sm:$0xff] %v1385_v36  ;;  %2337 = vst [vmem:[#allocation97_spill] sm:$0xff] %v1388_v20  ;;  %v1391_v60 = vld [vmem:[%s954_s18 + $0x2a8] sm:$0xff]  ;;  %v1394_v41 = vld [vmem:[%s954_s18 + $0x2b0] sm:$0xff] }
  0x4b   : > { %2338 = vst [vmem:[#allocation98_spill] sm:$0xff] %v1391_v60  ;;  %2339 = vst [vmem:[#allocation99_spill] sm:$0xff] %v1394_v41  ;;  %v1397_v56 = vld [vmem:[%s954_s18 + $0x2b8] sm:$0xff]  ;;  %v1406_v49 = vld [vmem:[%s928_s15 + $0x320] sm:$0xff] }
  0x4c   : > { %2340 = vst [vmem:[#allocation100_spill] sm:$0xff] %v1397_v56  ;;  %2341 = vst [vmem:[#allocation101_spill] sm:$0xff] %v1406_v49  ;;  %v1409_v23 = vld [vmem:[%s928_s15 + $0x328] sm:$0xff]  ;;  %v1412_v21 = vld [vmem:[%s928_s15 + $0x330] sm:$0xff] }
  0x4d   : > { %2342 = vst [vmem:[#allocation102_spill] sm:$0xff] %v1409_v23  ;;  %2343 = vst [vmem:[#allocation103_spill] sm:$0xff] %v1412_v21  ;;  %v1415_v45 = vld [vmem:[%s954_s18 + $0x2c0] sm:$0xff]  ;;  %v1418_v50 = vld [vmem:[%s954_s18 + $0x2c8] sm:$0xff] }
  0x4e   : > { %2344 = vst [vmem:[#allocation104_spill] sm:$0xff] %v1415_v45  ;;  %2345 = vst [vmem:[#allocation105_spill] sm:$0xff] %v1418_v50  ;;  %v1421_v55 = vld [vmem:[%s954_s18 + $0x2d0] sm:$0xff]  ;;  %v1430_v58 = vld [vmem:[%s928_s15] sm:$0xff] }
  0x4f   : > { %2346 = vst [vmem:[#allocation106_spill] sm:$0xff] %v1421_v55  ;;  %v1433_v32 = vld [vmem:[%s928_s15 + $0x338] sm:$0xff]  ;;  %v1436_v30 = vld [vmem:[%s928_s15 + $0x340] sm:$0xff]  ;;  %v1439_v27 = vld [vmem:[%s928_s15 + $0x348] sm:$0xff] }
  0x50   : > { %2347 = vst [vmem:[#allocation107_spill] sm:$0xff] %v1433_v32  ;;  %2348 = vst [vmem:[#allocation108_spill] sm:$0xff] %v1436_v30  ;;  %v1442_v37 = vld [vmem:[%s954_s18] sm:$0xff]  ;;  %v1445_v60 = vld [vmem:[%s954_s18 + $0x2d8] sm:$0xff] }
  0x51   : > { %2349 = vst [vmem:[#allocation109_spill] sm:$0xff] %v1439_v27  ;;  %2350 = vst [vmem:[#allocation110_spill] sm:$0xff] %v1445_v60  ;;  %v1448_v62 = vld [vmem:[%s954_s18 + $0x2e0] sm:$0xff]  ;;  %v1451_v63 = vld [vmem:[%s954_s18 + $0x2e8] sm:$0xff] }
  0x52   : > { %2351 = vst [vmem:[#allocation111_spill] sm:$0xff] %v1448_v62  ;;  %2352 = vst [vmem:[#allocation112_spill] sm:$0xff] %v1451_v63  ;;  %v1460_v39 = vld [vmem:[%s928_s15 + $0x8] sm:$0xff]  ;;  %v1463_v46 = vld [vmem:[%s928_s15 + $0x350] sm:$0xff] }
  0x53   : > { %v1466_v59 = vld [vmem:[%s928_s15 + $0x358] sm:$0xff]  ;;  %v1469_v53 = vld [vmem:[%s928_s15 + $0x360] sm:$0xff]  ;;  %v1472_v56 = vld [vmem:[%s954_s18 + $0x8] sm:$0xff] }
  0x54   : > { %2353 = vst [vmem:[#allocation113_spill] sm:$0xff] %v1466_v59  ;;  %2354 = vst [vmem:[#allocation114_spill] sm:$0xff] %v1469_v53  ;;  %v1475_v45 = vld [vmem:[%s954_s18 + $0x2f0] sm:$0xff]  ;;  %v1478_v47 = vld [vmem:[%s954_s18 + $0x2f8] sm:$0xff]  ;;  %v423_v21 = vsub.f32 %v1460_v39, %v1472_v56 }
  0x55   : > { %2355 = vst [vmem:[#allocation115_spill] sm:$0xff] %v1475_v45  ;;  %2356 = vst [vmem:[#allocation116_spill] sm:$0xff] %v1478_v47  ;;  %v1481_v41 = vld [vmem:[%s954_s18 + $0x300] sm:$0xff]  ;;  %v1490_v48 = vld [vmem:[%s928_s15 + $0x10] sm:$0xff]  ;;  %v422_v47 = vsub.f32 %v1430_v58, %v1442_v37 }
  0x56   : > { %2357 = vst [vmem:[#allocation117_spill] sm:$0xff] %v1481_v41  ;;  %v1493_v28 = vld [vmem:[%s928_s15 + $0x368] sm:$0xff]  ;;  %v1496_v16 = vld [vmem:[%s928_s15 + $0x370] sm:$0xff]  ;;  %v1499_v52 = vld [vmem:[%s928_s15 + $0x378] sm:$0xff] }
  0x57   : > { %2358 = vst [vmem:[#allocation118_spill] sm:$0xff] %v1496_v16  ;;  %2359 = vst [vmem:[#allocation119_spill] sm:$0xff] %v1499_v52  ;;  %v1502_v55 = vld [vmem:[%s954_s18 + $0x10] sm:$0xff]  ;;  %v1505_v60 = vld [vmem:[%s954_s18 + $0x308] sm:$0xff] }
  0x58   : > { %2360 = vst [vmem:[#allocation120_spill] sm:$0xff] %v1505_v60  ;;  %v1508_v29 = vld [vmem:[%s954_s18 + $0x310] sm:$0xff]  ;;  %v1511_v50 = vld [vmem:[%s954_s18 + $0x318] sm:$0xff]  ;;  %v1523_v22 = vld [vmem:[%s928_s15 + $0x380] sm:$0xff]  ;;  %v424_v27 = vsub.f32 %v1490_v48, %v1502_v55 }
  0x59   : > { %2361 = vst [vmem:[#allocation121_spill] sm:$0xff] %v1508_v29  ;;  %2362 = vst [vmem:[#allocation122_spill] sm:$0xff] %v1511_v50  ;;  %v1520_v57 = vld [vmem:[%s928_s15 + $0x18] sm:$0xff]  ;;  %v1526_v15 = vld [vmem:[%s928_s15 + $0x388] sm:$0xff] }
  0x5a   : > { %v1529_v51 = vld [vmem:[%s928_s15 + $0x390] sm:$0xff]  ;;  %v1532_v14 = vld [vmem:[%s954_s18 + $0x18] sm:$0xff]  ;;  %v1535_v63 = vld [vmem:[%s954_s18 + $0x320] sm:$0xff] }
  0x5b   : > { %2363 = vst [vmem:[#allocation123_spill] sm:$0xff] %v1529_v51  ;;  %2364 = vst [vmem:[#allocation124_spill] sm:$0xff] %v1535_v63  ;;  %v1538_v61 = vld [vmem:[%s954_s18 + $0x328] sm:$0xff]  ;;  %v1541_v62 = vld [vmem:[%s954_s18 + $0x330] sm:$0xff]  ;;  %v425_v48 = vsub.f32 %v1520_v57, %v1532_v14 }
  0x5c   : > { %2365 = vst [vmem:[#allocation125_spill] sm:$0xff] %v1538_v61  ;;  %2366 = vst [vmem:[#allocation126_spill] sm:$0xff] %v1541_v62  ;;  %v1550_v54 = vld [vmem:[%s928_s15 + $0x398] sm:$0xff]  ;;  %v1553_v45 = vld [vmem:[%s928_s15 + $0x3a0] sm:$0xff] }
  0x5d   : > { %v1556_v31 = vld [vmem:[%s928_s15 + $0x3a8] sm:$0xff]  ;;  %v1559_v44 = vld [vmem:[%s954_s18 + $0x338] sm:$0xff]  ;;  %v1562_v12 = vld [vmem:[%s954_s18 + $0x340] sm:$0xff] }
  0x5e   : > { %2367 = vst [vmem:[#allocation127_spill] sm:$0xff] %v1556_v31  ;;  %2368 = vst [vmem:[#allocation128_spill] sm:$0xff] %v1559_v44  ;;  %v1565_v41 = vld [vmem:[%s954_s18 + $0x348] sm:$0xff]  ;;  %v1574_v20 = vld [vmem:[%s928_s15 + $0x3b0] sm:$0xff] }
  0x5f   : > { %2369 = vst [vmem:[#allocation129_spill] sm:$0xff] %v1562_v12  ;;  %2370 = vst [vmem:[#allocation130_spill] sm:$0xff] %v1565_v41  ;;  %v1577_v29 = vld [vmem:[%s928_s15 + $0x3b8] sm:$0xff]  ;;  %v1580_v36 = vld [vmem:[%s928_s15 + $0x3c0] sm:$0xff]  ;;  %v551_v41 = vand.u32 2147483647, %v423_v21 }
  0x60   : > { %2371 = vst [vmem:[#allocation131_spill] sm:$0xff] %v1580_v36  ;;  %v1583_v60 = vld [vmem:[%s954_s18 + $0x350] sm:$0xff]  ;;  %v1586_v38 = vld [vmem:[%s954_s18 + $0x358] sm:$0xff]  ;;  %v1589_v63 = vld [vmem:[%s954_s18 + $0x360] sm:$0xff] }
  0x61   : > { %2372 = vst [vmem:[#allocation132_spill] sm:$0xff] %v1583_v60  ;;  %2373 = vst [vmem:[#allocation133_spill] sm:$0xff] %v1586_v38  ;;  %v1600_v61 = vld [vmem:[%s928_s15 + $0x20] sm:$0xff]  ;;  %v1603_v23 = vld [vmem:[%s928_s15 + $0x3c8] sm:$0xff] }
  0x62   : > { %2374 = vst [vmem:[#allocation134_spill] sm:$0xff] %v1589_v63  ;;  %2375 = vst [vmem:[#allocation135_spill] sm:$0xff] %v1603_v23  ;;  %v1606_v37 = vld [vmem:[%s928_s15 + $0x3d0] sm:$0xff]  ;;  %v1609_v58 = vld [vmem:[%s928_s15 + $0x3d8] sm:$0xff]  ;;  %v550_v63 = vand.u32 2147483647, %v422_v47 }
  0x63   : > { %2376 = vst [vmem:[#allocation136_spill] sm:$0xff] %v1606_v37  ;;  %2377 = vst [vmem:[#allocation137_spill] sm:$0xff] %v1609_v58  ;;  %v1612_v50 = vld [vmem:[%s954_s18 + $0x20] sm:$0xff]  ;;  %v1615_v44 = vld [vmem:[%s954_s18 + $0x368] sm:$0xff]  ;;  %v553_v58 = vand.u32 2147483647, %v425_v48 }
  0x64   : > { %v1618_v62 = vld [vmem:[%s954_s18 + $0x370] sm:$0xff]  ;;  %v1621_v12 = vld [vmem:[%s954_s18 + $0x378] sm:$0xff]  ;;  %v1632_v32 = vld [vmem:[%s928_s15 + $0x3e0] sm:$0xff] }
  0x65   : > { %2378 = vst [vmem:[#allocation138_spill] sm:$0xff] %v1618_v62  ;;  %2379 = vst [vmem:[#allocation139_spill] sm:$0xff] %v1621_v12  ;;  %v1635_v49 = vld [vmem:[%s928_s15 + $0x3e8] sm:$0xff]  ;;  %v1638_v40 = vld [vmem:[%s928_s15 + $0x3f0] sm:$0xff] }
  0x66   : > { %2380 = vst [vmem:[#allocation140_spill] sm:$0xff] %v1632_v32  ;;  %2381 = vst [vmem:[#allocation141_spill] sm:$0xff] %v1635_v49  ;;  %v1641_v43 = vld [vmem:[%s954_s18 + $0x380] sm:$0xff]  ;;  %v1644_v39 = vld [vmem:[%s954_s18 + $0x388] sm:$0xff] }
  0x67   : > { %2382 = vst [vmem:[#allocation142_spill] sm:$0xff] %v1638_v40  ;;  %2383 = vst [vmem:[#allocation143_spill] sm:$0xff] %v1644_v39  ;;  %v1647_v56 = vld [vmem:[%s954_s18 + $0x390] sm:$0xff]  ;;  %v1658_v53 = vld [vmem:[%s928_s15 + $0x3f8] sm:$0xff]  ;;  %v552_v39 = vand.u32 2147483647, %v424_v27 }
  0x68   : > { %2384 = vst [vmem:[#allocation144_spill] sm:$0xff] %v1647_v56  ;;  %2385 = vst [vmem:[#allocation145_spill] sm:$0xff] %v1658_v53  ;;  %v1661_v38 = vld [vmem:[%s954_s18 + $0x398] sm:$0xff]  ;;  %v1664_v59 = vld [vmem:[%s954_s18 + $0x3a0] sm:$0xff] }
  0x69   : > { %2386 = vst [vmem:[#allocation146_spill] sm:$0xff] %v1664_v59  ;;  %v1667_v60 = vld [vmem:[%s954_s18 + $0x3a8] sm:$0xff]  ;;  %v1680_v52 = vld [vmem:[%s954_s18 + $0x3b0] sm:$0xff]  ;;  %v1683_v62 = vld [vmem:[%s954_s18 + $0x3b8] sm:$0xff]  ;;  %v426_v59 = vsub.f32 %v1600_v61, %v1612_v50 }
  0x6a   : > { %2387 = vst [vmem:[#allocation147_spill] sm:$0xff] %v1667_v60  ;;  %v171_v30 = vld [vmem:[%s928_s15 + $0x28] sm:$0xff]  ;;  %2388 = vst [vmem:[#allocation148_spill] sm:$0xff] %v1683_v62  ;;  %v1686_v16 = vld [vmem:[%s954_s18 + $0x3c0] sm:$0xff] }
  0x6b   : > { %v299_v12 = vld [vmem:[%s954_s18 + $0x28] sm:$0xff]  ;;  %2389 = vst [vmem:[#allocation149_spill] sm:$0xff] %v1686_v16  ;;  %v1698_v56 = vld [vmem:[%s954_s18 + $0x3d0] sm:$0xff]  ;;  %v1701_v51 = vld [vmem:[%s954_s18 + $0x3d8] sm:$0xff]  ;;  %v554_v50 = vand.u32 2147483647, %v426_v59 }
  0x6c   : > { %v1695_v55 = vld [vmem:[%s954_s18 + $0x3c8] sm:$0xff]  ;;  %2391 = vst [vmem:[#allocation151_spill] sm:$0xff] %v1698_v56  ;;  %2392 = vst [vmem:[#allocation152_spill] sm:$0xff] %v1701_v51  ;;  %v1710_v60 = vld [vmem:[%s954_s18 + $0x3e0] sm:$0xff]  ;;  %v427_v51 = vsub.f32 %v171_v30, %v299_v12  ;;  %v678_v56 = vadd.f32 %v551_v41, %v550_v63 }
  0x6d   : > { %2390 = vst [vmem:[#allocation150_spill] sm:$0xff] %v1695_v55  ;;  %2393 = vst [vmem:[#allocation153_spill] sm:$0xff] %v1710_v60  ;;  %v1713_v47 = vld [vmem:[%s954_s18 + $0x3e8] sm:$0xff]  ;;  %v1716_v31 = vld [vmem:[%s954_s18 + $0x3f0] sm:$0xff] }
  0x6e   : > { %2394 = vst [vmem:[#allocation154_spill] sm:$0xff] %v1713_v47  ;;  %2395 = vst [vmem:[#allocation155_spill] sm:$0xff] %v1716_v31  ;;  %v1727_v57 = vld [vmem:[%s954_s18 + $0x3f8] sm:$0xff]  ;;  %v172_v55 = vld [vmem:[%s928_s15 + $0x30] sm:$0xff]  ;;  %v679_v47 = vadd.f32 %v678_v56, %v552_v39  ;;  %v555_v40 = vand.u32 2147483647, %v427_v51 }
  0x6f   : > { %2396 = vst [vmem:[#allocation156_spill] sm:$0xff] %v1727_v57  ;;  %v300_v14 = vld [vmem:[%s954_s18 + $0x30] sm:$0xff]  ;;  %v173_v16 = vld [vmem:[%s928_s15 + $0x38] sm:$0xff]  ;;  %v174_v61 = vld [vmem:[%s928_s15 + $0x40] sm:$0xff] }
  0x70   : > { %v301_v60 = vld [vmem:[%s954_s18 + $0x38] sm:$0xff]  ;;  %v428_v32 = vsub.f32 %v172_v55, %v300_v14  ;;  %v302_v27 = vld [vmem:[%s954_s18 + $0x40] sm:$0xff]  ;;  %v680_v49 = vadd.f32 %v679_v47, %v553_v58  ;;  %v175_v37 = vld [vmem:[%s928_s15 + $0x48] sm:$0xff] }
  0x71   : > { %v429_v31 = vsub.f32 %v173_v16, %v301_v60  ;;  %v303_v12 = vld [vmem:[%s954_s18 + $0x48] sm:$0xff]  ;;  %v430_v30 = vsub.f32 %v174_v61, %v302_v27  ;;  %v176_v48 = vld [vmem:[%s928_s15 + $0x50] sm:$0xff]  ;;  %v177_v14 = vld [vmem:[%s928_s15 + $0x58] sm:$0xff] }
  0x72   : > { %v556_v41 = vand.u32 2147483647, %v428_v32  ;;  %v681_v63 = vadd.f32 %v680_v49, %v554_v50  ;;  %v304_v55 = vld [vmem:[%s954_s18 + $0x50] sm:$0xff]  ;;  %v431_v59 = vsub.f32 %v175_v37, %v303_v12  ;;  %v305_v16 = vld [vmem:[%s954_s18 + $0x58] sm:$0xff]  ;;  %v178_v47 = vld [vmem:[%s928_s15 + $0x60] sm:$0xff] }
  0x73   : > { %v557_v39 = vand.u32 2147483647, %v429_v31  ;;  %v432_v51 = vsub.f32 %v176_v48, %v304_v55  ;;  %v558_v60 = vand.u32 2147483647, %v430_v30  ;;  %v306_v61 = vld [vmem:[%s954_s18 + $0x60] sm:$0xff]  ;;  %v433_v32 = vsub.f32 %v177_v14, %v305_v16  ;;  %v179_v27 = vld [vmem:[%s928_s15 + $0x68] sm:$0xff] }
  0x74   : > { %v682_v56 = vadd.f32 %v681_v63, %v555_v40  ;;  %v559_v49 = vand.u32 2147483647, %v431_v59  ;;  %v307_v37 = vld [vmem:[%s954_s18 + $0x68] sm:$0xff]  ;;  %v434_v31 = vsub.f32 %v178_v47, %v306_v61  ;;  %v180_v63 = vld [vmem:[%s928_s15 + $0x70] sm:$0xff]  ;;  %v309_v14 = vld [vmem:[%s954_s18 + $0x78] sm:$0xff] }
  0x75   : > { %v560_v40 = vand.u32 2147483647, %v432_v51  ;;  %v308_v48 = vld [vmem:[%s954_s18 + $0x70] sm:$0xff]  ;;  %v435_v30 = vsub.f32 %v179_v27, %v307_v37  ;;  %v310_v47 = vld [vmem:[%s954_s18 + $0x80] sm:$0xff]  ;;  %v311_v27 = vld [vmem:[%s954_s18 + $0x88] sm:$0xff] }
  0x76   : > { %v683_v58 = vadd.f32 %v682_v56, %v556_v41  ;;  %v561_v41 = vand.u32 2147483647, %v433_v32  ;;  %v181_v56 = vld [vmem:[%s928_s15 + $0x78] sm:$0xff]  ;;  %v436_v59 = vsub.f32 %v180_v63, %v308_v48  ;;  %v312_v63 = vld [vmem:[%s954_s18 + $0x90] sm:$0xff] }
  0x77   : > { %v437_v51 = vsub.f32 %v181_v56, %v309_v14  ;;  %v313_v56 = vld [vmem:[%s954_s18 + $0x98] sm:$0xff]  ;;  %v324_v21 = vld [vmem:[%s954_s18 + $0xf0] sm:$0xff] }
  0x78   : > { %v684_v50 = vadd.f32 %v683_v58, %v557_v39  ;;  %v562_v39 = vand.u32 2147483647, %v434_v31  ;;  %v182_v58 = vld [vmem:[%s928_s15 + $0x80] sm:$0xff] }
  0x79   : > { %v438_v32 = vsub.f32 %v182_v58, %v310_v47  ;;  %v314_v58 = vld [vmem:[%s954_s18 + $0xa0] sm:$0xff] }
  0x7a   : > { %v685_v12 = vadd.f32 %v684_v50, %v558_v60  ;;  %v563_v60 = vand.u32 2147483647, %v435_v30  ;;  %v183_v50 = vld [vmem:[%s928_s15 + $0x88] sm:$0xff] }
  0x7b   : > { %v439_v31 = vsub.f32 %v183_v50, %v311_v27  ;;  %v315_v50 = vld [vmem:[%s954_s18 + $0xa8] sm:$0xff] }
  0x7c   : > { %v686_v55 = vadd.f32 %v685_v12, %v559_v49  ;;  %v564_v49 = vand.u32 2147483647, %v436_v59  ;;  %v184_v12 = vld [vmem:[%s928_s15 + $0x90] sm:$0xff] }
  0x7d   : > { %v440_v30 = vsub.f32 %v184_v12, %v312_v63  ;;  %v316_v12 = vld [vmem:[%s954_s18 + $0xb0] sm:$0xff] }
  0x7e   : > { %v687_v16 = vadd.f32 %v686_v55, %v560_v40  ;;  %v565_v40 = vand.u32 2147483647, %v437_v51  ;;  %v185_v55 = vld [vmem:[%s928_s15 + $0x98] sm:$0xff] }
  0x7f   : > { %v441_v59 = vsub.f32 %v185_v55, %v313_v56  ;;  %v317_v55 = vld [vmem:[%s954_s18 + $0xb8] sm:$0xff] }
  0x80   : > { %v688_v61 = vadd.f32 %v687_v16, %v561_v41  ;;  %v566_v41 = vand.u32 2147483647, %v438_v32  ;;  %v186_v16 = vld [vmem:[%s928_s15 + $0xa0] sm:$0xff] }
  0x81   : > { %v442_v51 = vsub.f32 %v186_v16, %v314_v58  ;;  %v318_v16 = vld [vmem:[%s954_s18 + $0xc0] sm:$0xff] }
  0x82   : > { %v689_v37 = vadd.f32 %v688_v61, %v562_v39  ;;  %v567_v39 = vand.u32 2147483647, %v439_v31  ;;  %v187_v61 = vld [vmem:[%s928_s15 + $0xa8] sm:$0xff] }
  0x83   : > { %v443_v32 = vsub.f32 %v187_v61, %v315_v50  ;;  %v319_v61 = vld [vmem:[%s954_s18 + $0xc8] sm:$0xff] }
  0x84   : > { %v690_v48 = vadd.f32 %v689_v37, %v563_v60  ;;  %v568_v60 = vand.u32 2147483647, %v440_v30  ;;  %v188_v37 = vld [vmem:[%s928_s15 + $0xb0] sm:$0xff] }
  0x85   : > { %v444_v31 = vsub.f32 %v188_v37, %v316_v12  ;;  %v320_v37 = vld [vmem:[%s954_s18 + $0xd0] sm:$0xff] }
  0x86   : > { %v691_v14 = vadd.f32 %v690_v48, %v564_v49  ;;  %v569_v49 = vand.u32 2147483647, %v441_v59  ;;  %v189_v48 = vld [vmem:[%s928_s15 + $0xb8] sm:$0xff] }
  0x87   : > { %v445_v30 = vsub.f32 %v189_v48, %v317_v55  ;;  %v321_v48 = vld [vmem:[%s954_s18 + $0xd8] sm:$0xff] }
  0x88   : > { %v692_v47 = vadd.f32 %v691_v14, %v565_v40  ;;  %v570_v40 = vand.u32 2147483647, %v442_v51  ;;  %v190_v14 = vld [vmem:[%s928_s15 + $0xc0] sm:$0xff] }
  0x89   : > { %v446_v59 = vsub.f32 %v190_v14, %v318_v16  ;;  %v322_v14 = vld [vmem:[%s954_s18 + $0xe0] sm:$0xff] }
  0x8a   : > { %v693_v27 = vadd.f32 %v692_v47, %v566_v41  ;;  %v571_v41 = vand.u32 2147483647, %v443_v32  ;;  %v191_v47 = vld [vmem:[%s928_s15 + $0xc8] sm:$0xff] }
  0x8b   : > { %v447_v51 = vsub.f32 %v191_v47, %v319_v61  ;;  %v323_v47 = vld [vmem:[%s954_s18 + $0xe8] sm:$0xff] }
  0x8c   : > { %v694_v63 = vadd.f32 %v693_v27, %v567_v39  ;;  %v572_v39 = vand.u32 2147483647, %v444_v31  ;;  %v192_v27 = vld [vmem:[%s928_s15 + $0xd0] sm:$0xff] }
  0x8d   : > { %v448_v32 = vsub.f32 %v192_v27, %v320_v37  ;;  %v325_v37 = vld [vmem:[%s954_s18 + $0xf8] sm:$0xff] }
  0x8e   : > { %v695_v56 = vadd.f32 %v694_v63, %v568_v60  ;;  %v573_v60 = vand.u32 2147483647, %v445_v30  ;;  %v193_v63 = vld [vmem:[%s928_s15 + $0xd8] sm:$0xff] }
  0x8f   : > { %v449_v31 = vsub.f32 %v193_v63, %v321_v48  ;;  %v198_v63 = vld [vmem:[%s928_s15 + $0x100] sm:$0xff] }
  0x90   : > { %v696_v58 = vadd.f32 %v695_v56, %v569_v49  ;;  %v574_v49 = vand.u32 2147483647, %v446_v59  ;;  %v194_v56 = vld [vmem:[%s928_s15 + $0xe0] sm:$0xff] }
  0x91   : > { %v450_v30 = vsub.f32 %v194_v56, %v322_v14  ;;  %v577_v27 = vand.u32 2147483647, %v449_v31  ;;  %v2397_v31 = vsub.f32 %v931_v0, %v975_v13  ;;  %v2401_v0 = vsub.f32 %v943_v4, %v1007_v24 }
  0x92   : > { %v697_v50 = vadd.f32 %v696_v58, %v570_v40  ;;  %v575_v40 = vand.u32 2147483647, %v447_v51  ;;  %v195_v58 = vld [vmem:[%s928_s15 + $0xe8] sm:$0xff]  ;;  %v326_v51 = vld [vmem:[%s954_s18 + $0x100] sm:$0xff]  ;;  %v2405_v4 = vsub.f32 %v960_v8, %v1034_v34 }
  0x93   : > { %v451_v57 = vsub.f32 %v195_v58, %v323_v47  ;;  %v578_v53 = vand.u32 2147483647, %v450_v30  ;;  %v454_v36 = vsub.f32 %v198_v63, %v326_v51  ;;  %v587_v13 = vand.u32 2147483647, %v2401_v0  ;;  %v2408_v63 = vld [vmem:[#allocation15_spill] sm:$0xff] }
  0x94   : > { %v698_v12 = vadd.f32 %v697_v50, %v571_v41  ;;  %v576_v41 = vand.u32 2147483647, %v448_v32  ;;  %v196_v50 = vld [vmem:[%s928_s15 + $0xf0] sm:$0xff]  ;;  %v591_v24 = vand.u32 2147483647, %v2405_v4 }
  0x95   : > { %v579_v48 = vand.u32 2147483647, %v451_v57  ;;  %v582_v14 = vand.u32 2147483647, %v454_v36 }
  0x96   : > { %v699_v55 = vadd.f32 %v698_v12, %v572_v39  ;;  %v197_v39 = vld [vmem:[%s928_s15 + $0xf8] sm:$0xff]  ;;  %v452_v12 = vsub.f32 %v196_v50, %v324_v21  ;;  %v2398_v21 = vsub.f32 %v934_v1, %v987_v17  ;;  %v2402_v1 = vsub.f32 %v946_v5, %v1010_v25 }
  0x97   : > { %v2406_v5 = vsub.f32 %v963_v9, %v1037_v35 }
  0x98   : > { %v700_v16 = vadd.f32 %v699_v55, %v573_v60  ;;  %v453_v60 = vsub.f32 %v197_v39, %v325_v37  ;;  %v580_v62 = vand.u32 2147483647, %v452_v12  ;;  %v584_v47 = vand.u32 2147483647, %v2398_v21 }
  0x99   : > { %v588_v17 = vand.u32 2147483647, %v2402_v1  ;;  %v592_v25 = vand.u32 2147483647, %v2406_v5  ;;  %v2428_v1 = vld [vmem:[#allocation8_spill] sm:$0xff] }
  0x9a   : > { %v701_v61 = vadd.f32 %v700_v16, %v574_v49  ;;  %v581_v32 = vand.u32 2147483647, %v453_v60  ;;  %v2410_v60 = vld [vmem:[#allocation2_spill] sm:$0xff] }
  0x9c   : > { %v702_v59 = vadd.f32 %v701_v61, %v575_v40  ;;  %v583_v40 = vand.u32 2147483647, %v2397_v31 }
  0x9e   : > { %v703_v23 = vadd.f32 %v702_v59, %v576_v41 }
  0xa0   : > { %v704_v55 = vadd.f32 %v703_v23, %v577_v27  ;;  %v2399_v23 = vsub.f32 %v937_v2, %v990_v18  ;;  %v2403_v2 = vsub.f32 %v949_v6, %v1013_v26  ;;  %v2407_v6 = vsub.f32 %v966_v10, %v1055_v42 }
  0xa2   : > { %v705_v56 = vadd.f32 %v704_v55, %v578_v53  ;;  %v585_v57 = vand.u32 2147483647, %v2399_v23  ;;  %v2400_v53 = vsub.f32 %v940_v3, %v993_v19  ;;  %v589_v18 = vand.u32 2147483647, %v2403_v2  ;;  %v2423_v23 = vld [vmem:[#allocation26_spill] sm:$0xff] }
  0xa3   : > { %v2404_v3 = vsub.f32 %v957_v7, %v1031_v33  ;;  %v593_v26 = vand.u32 2147483647, %v2407_v6  ;;  %v2409_v7 = vsub.f32 %v969_v11, %v2408_v63  ;;  %v2437_v6 = vld [vmem:[#allocation11_spill] sm:$0xff] }
  0xa4   : > { %v706_v49 = vadd.f32 %v705_v56, %v579_v48  ;;  %v586_v36 = vand.u32 2147483647, %v2400_v53  ;;  %v2411_v48 = vld [vmem:[#allocation16_spill] sm:$0xff]  ;;  %v2413_v56 = vld [vmem:[#allocation3_spill] sm:$0xff] }
  0xa5   : > { %v590_v19 = vand.u32 2147483647, %v2404_v3  ;;  %v594_v33 = vand.u32 2147483647, %v2409_v7  ;;  %v2412_v8 = vsub.f32 %v2410_v60, %v2411_v48  ;;  %v2432_v3 = vld [vmem:[#allocation32_spill] sm:$0xff] }
  0xa6   : > { %v707_v16 = vadd.f32 %v706_v49, %v580_v62 }
  0xa7   : > { %v595_v34 = vand.u32 2147483647, %v2412_v8 }
  0xa8   : > { %v708_v58 = vadd.f32 %v707_v16, %v581_v32  ;;  %v2414_v32 = vld [vmem:[#allocation20_spill] sm:$0xff]  ;;  %v2417_v16 = vld [vmem:[#allocation21_spill] sm:$0xff] }
  0xa9   : > { %v2415_v9 = vsub.f32 %v2413_v56, %v2414_v32 }
  0xaa   : > { %v709_v30 = vadd.f32 %v708_v58, %v582_v14  ;;  %v2416_v14 = vld [vmem:[#allocation4_spill] sm:$0xff]  ;;  %v2420_v58 = vld [vmem:[#allocation22_spill] sm:$0xff] }
  0xab   : > { %v596_v35 = vand.u32 2147483647, %v2415_v9  ;;  %v2418_v10 = vsub.f32 %v2416_v14, %v2417_v16 }
  0xac   : > { %v710_v41 = vadd.f32 %v709_v30, %v583_v40  ;;  %v2419_v40 = vld [vmem:[#allocation5_spill] sm:$0xff]  ;;  %v2422_v30 = vld [vmem:[#allocation6_spill] sm:$0xff] }
  0xad   : > { %v597_v42 = vand.u32 2147483647, %v2418_v10  ;;  %v2421_v11 = vsub.f32 %v2419_v40, %v2420_v58 }
  0xae   : > { %v711_v62 = vadd.f32 %v710_v41, %v584_v47 }
  0xaf   : > { %v598_v21 = vand.u32 2147483647, %v2421_v11 }
  0xb0   : > { %v712_v61 = vadd.f32 %v711_v62, %v585_v57  ;;  %v2424_v57 = vsub.f32 %v2422_v30, %v2423_v23  ;;  %v2426_v62 = vld [vmem:[#allocation27_spill] sm:$0xff] }
  0xb2   : > { %v713_v50 = vadd.f32 %v712_v61, %v586_v36  ;;  %v599_v41 = vand.u32 2147483647, %v2424_v57  ;;  %v2425_v36 = vld [vmem:[#allocation7_spill] sm:$0xff] }
  0xb3   : > { %v2427_v0 = vsub.f32 %v2425_v36, %v2426_v62 }
  0xb4   : > { %v714_v27 = vadd.f32 %v713_v50, %v587_v13 }
  0xb5   : > { %v600_v13 = vand.u32 2147483647, %v2427_v0 }
  0xb6   : > { %v715_v59 = vadd.f32 %v714_v27, %v588_v17  ;;  %v2429_v17 = vld [vmem:[#allocation28_spill] sm:$0xff]  ;;  %v2431_v27 = vld [vmem:[#allocation9_spill] sm:$0xff] }
  0xb7   : > { %v2430_v50 = vsub.f32 %v2428_v1, %v2429_v17 }
  0xb8   : > { %v716_v39 = vadd.f32 %v715_v59, %v589_v18 }
  0xb9   : > { %v601_v2 = vand.u32 2147483647, %v2430_v50 }
  0xba   : > { %v717_v37 = vadd.f32 %v716_v39, %v590_v19  ;;  %v2433_v19 = vsub.f32 %v2431_v27, %v2432_v3  ;;  %v2435_v39 = vld [vmem:[#allocation33_spill] sm:$0xff] }
  0xbc   : > { %v718_v12 = vadd.f32 %v717_v37, %v591_v24  ;;  %v602_v59 = vand.u32 2147483647, %v2433_v19  ;;  %v2434_v24 = vld [vmem:[#allocation10_spill] sm:$0xff] }
  0xbd   : > { %v2436_v5 = vsub.f32 %v2434_v24, %v2435_v39 }
  0xbe   : > { %v719_v51 = vadd.f32 %v718_v12, %v592_v25 }
  0xbf   : > { %v603_v25 = vand.u32 2147483647, %v2436_v5 }
  0xc0   : > { %v720_v55 = vadd.f32 %v719_v51, %v593_v26  ;;  %v2438_v26 = vld [vmem:[#allocation34_spill] sm:$0xff] }
  0xc1   : > { %v2439_v12 = vsub.f32 %v2437_v6, %v2438_v26  ;;  %v2441_v51 = vld [vmem:[#allocation38_spill] sm:$0xff] }
  0xc2   : > { %v721_v49 = vadd.f32 %v720_v55, %v594_v33  ;;  %v2440_v33 = vld [vmem:[#allocation12_spill] sm:$0xff]  ;;  %v2444_v55 = vld [vmem:[#allocation39_spill] sm:$0xff] }
  0xc3   : > { %v604_v63 = vand.u32 2147483647, %v2439_v12  ;;  %v2442_v60 = vsub.f32 %v2440_v33, %v2441_v51 }
  0xc4   : > { %v722_v31 = vadd.f32 %v721_v49, %v595_v34  ;;  %v2443_v34 = vld [vmem:[#allocation13_spill] sm:$0xff]  ;;  %v2447_v49 = vld [vmem:[#allocation40_spill] sm:$0xff] }
  0xc5   : > { %v605_v48 = vand.u32 2147483647, %v2442_v60  ;;  %v2445_v56 = vsub.f32 %v2443_v34, %v2444_v55 }
  0xc6   : > { %v723_v47 = vadd.f32 %v722_v31, %v596_v35  ;;  %v2446_v35 = vld [vmem:[#allocation14_spill] sm:$0xff]  ;;  %v2450_v31 = vld [vmem:[#allocation44_spill] sm:$0xff] }
  0xc7   : > { %v606_v32 = vand.u32 2147483647, %v2445_v56  ;;  %v2448_v14 = vsub.f32 %v2446_v35, %v2447_v49 }
  0xc8   : > { %v724_v53 = vadd.f32 %v723_v47, %v597_v42  ;;  %v2449_v42 = vld [vmem:[#allocation17_spill] sm:$0xff] }
  0xc9   : > { %v607_v16 = vand.u32 2147483647, %v2448_v14  ;;  %v2451_v40 = vsub.f32 %v2449_v42, %v2450_v31  ;;  %v2453_v47 = vld [vmem:[#allocation45_spill] sm:$0xff] }
  0xca   : > { %v725_v61 = vadd.f32 %v724_v53, %v598_v21  ;;  %v2452_v21 = vld [vmem:[#allocation18_spill] sm:$0xff] }
  0xcb   : > { %v608_v58 = vand.u32 2147483647, %v2451_v40  ;;  %v2454_v30 = vsub.f32 %v2452_v21, %v2453_v47  ;;  %v2456_v53 = vld [vmem:[#allocation46_spill] sm:$0xff] }
  0xcc   : > { %v726_v18 = vadd.f32 %v725_v61, %v599_v41  ;;  %v2455_v41 = vld [vmem:[#allocation19_spill] sm:$0xff]  ;;  %v2459_v61 = vld [vmem:[#allocation50_spill] sm:$0xff] }
  0xcd   : > { %v609_v23 = vand.u32 2147483647, %v2454_v30  ;;  %v2457_v36 = vsub.f32 %v2455_v41, %v2456_v53 }
  0xce   : > { %v727_v4 = vadd.f32 %v726_v18, %v600_v13  ;;  %v2458_v13 = vld [vmem:[#allocation23_spill] sm:$0xff] }
  0xcf   : > { %v610_v62 = vand.u32 2147483647, %v2457_v36  ;;  %v2460_v1 = vsub.f32 %v2458_v13, %v2459_v61  ;;  %v2462_v18 = vld [vmem:[#allocation51_spill] sm:$0xff] }
  0xd0   : > { %v728_v37 = vadd.f32 %v727_v4, %v601_v2  ;;  %v2461_v2 = vld [vmem:[#allocation24_spill] sm:$0xff] }
  0xd1   : > { %v611_v17 = vand.u32 2147483647, %v2460_v1  ;;  %v2463_v27 = vsub.f32 %v2461_v2, %v2462_v18  ;;  %v2465_v4 = vld [vmem:[#allocation52_spill] sm:$0xff] }
  0xd2   : > { %v729_v7 = vadd.f32 %v728_v37, %v602_v59  ;;  %v2464_v59 = vld [vmem:[#allocation25_spill] sm:$0xff]  ;;  %v2468_v37 = vld [vmem:[#allocation56_spill] sm:$0xff] }
  0xd3   : > { %v612_v3 = vand.u32 2147483647, %v2463_v27  ;;  %v2466_v24 = vsub.f32 %v2464_v59, %v2465_v4 }
  0xd4   : > { %v730_v8 = vadd.f32 %v729_v7, %v603_v25  ;;  %v2467_v25 = vld [vmem:[#allocation29_spill] sm:$0xff] }
  0xd5   : > { %v613_v39 = vand.u32 2147483647, %v2466_v24  ;;  %v2469_v6 = vsub.f32 %v2467_v25, %v2468_v37  ;;  %v2471_v7 = vld [vmem:[#allocation57_spill] sm:$0xff] }
  0xd6   : > { %v731_v9 = vadd.f32 %v730_v8, %v604_v63  ;;  %v2470_v63 = vld [vmem:[#allocation30_spill] sm:$0xff] }
  0xd7   : > { %v614_v26 = vand.u32 2147483647, %v2469_v6  ;;  %v2472_v33 = vsub.f32 %v2470_v63, %v2471_v7  ;;  %v2474_v8 = vld [vmem:[#allocation58_spill] sm:$0xff] }
  0xd8   : > { %v732_v10 = vadd.f32 %v731_v9, %v605_v48  ;;  %v2473_v48 = vld [vmem:[#allocation31_spill] sm:$0xff]  ;;  %v2477_v9 = vld [vmem:[#allocation62_spill] sm:$0xff] }
  0xd9   : > { %v615_v51 = vand.u32 2147483647, %v2472_v33  ;;  %v2475_v34 = vsub.f32 %v2473_v48, %v2474_v8 }
  0xda   : > { %v733_v11 = vadd.f32 %v732_v10, %v606_v32  ;;  %v2476_v32 = vld [vmem:[#allocation35_spill] sm:$0xff] }
  0xdb   : > { %v616_v55 = vand.u32 2147483647, %v2475_v34  ;;  %v2478_v35 = vsub.f32 %v2476_v32, %v2477_v9  ;;  %v2480_v10 = vld [vmem:[#allocation63_spill] sm:$0xff] }
  0xdc   : > { %v734_v57 = vadd.f32 %v733_v11, %v607_v16  ;;  %v2479_v16 = vld [vmem:[#allocation36_spill] sm:$0xff] }
  0xdd   : > { %v617_v49 = vand.u32 2147483647, %v2478_v35  ;;  %v2481_v42 = vsub.f32 %v2479_v16, %v2480_v10  ;;  %v2483_v11 = vld [vmem:[#allocation64_spill] sm:$0xff] }
  0xde   : > { %v735_v0 = vadd.f32 %v734_v57, %v608_v58  ;;  %v2482_v58 = vld [vmem:[#allocation37_spill] sm:$0xff]  ;;  %v2486_v57 = vld [vmem:[#allocation68_spill] sm:$0xff] }
  0xdf   : > { %v618_v31 = vand.u32 2147483647, %v2481_v42  ;;  %v2484_v21 = vsub.f32 %v2482_v58, %v2483_v11 }
  0xe0   : > { %v736_v50 = vadd.f32 %v735_v0, %v609_v23  ;;  %v2485_v23 = vld [vmem:[#allocation41_spill] sm:$0xff] }
  0xe1   : > { %v619_v47 = vand.u32 2147483647, %v2484_v21  ;;  %v2487_v41 = vsub.f32 %v2485_v23, %v2486_v57  ;;  %v2489_v0 = vld [vmem:[#allocation69_spill] sm:$0xff] }
  0xe2   : > { %v737_v19 = vadd.f32 %v736_v50, %v610_v62  ;;  %v2488_v62 = vld [vmem:[#allocation42_spill] sm:$0xff] }
  0xe3   : > { %v620_v53 = vand.u32 2147483647, %v2487_v41  ;;  %v2490_v13 = vsub.f32 %v2488_v62, %v2489_v0  ;;  %v2492_v50 = vld [vmem:[#allocation70_spill] sm:$0xff] }
  0xe4   : > { %v738_v5 = vadd.f32 %v737_v19, %v611_v17  ;;  %v2491_v17 = vld [vmem:[#allocation43_spill] sm:$0xff]  ;;  %v2495_v19 = vld [vmem:[#allocation74_spill] sm:$0xff] }
  0xe5   : > { %v621_v61 = vand.u32 2147483647, %v2490_v13  ;;  %v2493_v2 = vsub.f32 %v2491_v17, %v2492_v50 }
  0xe6   : > { %v739_v12 = vadd.f32 %v738_v5, %v612_v3  ;;  %v2494_v3 = vld [vmem:[#allocation47_spill] sm:$0xff] }
  0xe7   : > { %v622_v18 = vand.u32 2147483647, %v2493_v2  ;;  %v2496_v59 = vsub.f32 %v2494_v3, %v2495_v19  ;;  %v2498_v5 = vld [vmem:[#allocation75_spill] sm:$0xff] }
  0xe8   : > { %v740_v60 = vadd.f32 %v739_v12, %v613_v39  ;;  %v2497_v39 = vld [vmem:[#allocation48_spill] sm:$0xff] }
  0xe9   : > { %v623_v4 = vand.u32 2147483647, %v2496_v59  ;;  %v2499_v25 = vsub.f32 %v2497_v39, %v2498_v5  ;;  %v2501_v12 = vld [vmem:[#allocation76_spill] sm:$0xff] }
  0xea   : > { %v741_v56 = vadd.f32 %v740_v60, %v614_v26  ;;  %v2500_v26 = vld [vmem:[#allocation49_spill] sm:$0xff]  ;;  %v2504_v60 = vld [vmem:[#allocation80_spill] sm:$0xff] }
  0xeb   : > { %v624_v37 = vand.u32 2147483647, %v2499_v25  ;;  %v2502_v63 = vsub.f32 %v2500_v26, %v2501_v12 }
  0xec   : > { %v742_v14 = vadd.f32 %v741_v56, %v615_v51  ;;  %v2503_v51 = vld [vmem:[#allocation53_spill] sm:$0xff] }
  0xed   : > { %v625_v7 = vand.u32 2147483647, %v2502_v63  ;;  %v2505_v48 = vsub.f32 %v2503_v51, %v2504_v60  ;;  %v2507_v56 = vld [vmem:[#allocation81_spill] sm:$0xff] }
  0xee   : > { %v743_v40 = vadd.f32 %v742_v14, %v616_v55  ;;  %v2506_v55 = vld [vmem:[#allocation54_spill] sm:$0xff] }
  0xef   : > { %v626_v8 = vand.u32 2147483647, %v2505_v48  ;;  %v2508_v32 = vsub.f32 %v2506_v55, %v2507_v56  ;;  %v2510_v14 = vld [vmem:[#allocation82_spill] sm:$0xff] }
  0xf0   : > { %v744_v30 = vadd.f32 %v743_v40, %v617_v49  ;;  %v2509_v49 = vld [vmem:[#allocation55_spill] sm:$0xff]  ;;  %v2513_v40 = vld [vmem:[#allocation86_spill] sm:$0xff] }
  0xf1   : > { %v627_v9 = vand.u32 2147483647, %v2508_v32  ;;  %v2511_v16 = vsub.f32 %v2509_v49, %v2510_v14 }
  0xf2   : > { %v745_v36 = vadd.f32 %v744_v30, %v618_v31  ;;  %v2512_v31 = vld [vmem:[#allocation59_spill] sm:$0xff] }
  0xf3   : > { %v628_v10 = vand.u32 2147483647, %v2511_v16  ;;  %v2514_v58 = vsub.f32 %v2512_v31, %v2513_v40  ;;  %v2516_v30 = vld [vmem:[#allocation87_spill] sm:$0xff] }
  0xf4   : > { %v746_v1 = vadd.f32 %v745_v36, %v619_v47  ;;  %v2515_v47 = vld [vmem:[#allocation60_spill] sm:$0xff] }
  0xf5   : > { %v629_v11 = vand.u32 2147483647, %v2514_v58  ;;  %v2517_v23 = vsub.f32 %v2515_v47, %v2516_v30  ;;  %v2519_v36 = vld [vmem:[#allocation88_spill] sm:$0xff] }
  0xf6   : > { %v747_v27 = vadd.f32 %v746_v1, %v620_v53  ;;  %v2518_v53 = vld [vmem:[#allocation61_spill] sm:$0xff]  ;;  %v2522_v1 = vld [vmem:[#allocation92_spill] sm:$0xff] }
  0xf7   : > { %v630_v57 = vand.u32 2147483647, %v2517_v23  ;;  %v2520_v62 = vsub.f32 %v2518_v53, %v2519_v36 }
  0xf8   : > { %v748_v24 = vadd.f32 %v747_v27, %v621_v61  ;;  %v2521_v61 = vld [vmem:[#allocation65_spill] sm:$0xff] }
  0xf9   : > { %v631_v0 = vand.u32 2147483647, %v2520_v62  ;;  %v2523_v17 = vsub.f32 %v2521_v61, %v2522_v1  ;;  %v2525_v27 = vld [vmem:[#allocation93_spill] sm:$0xff] }
  0xfa   : > { %v749_v6 = vadd.f32 %v748_v24, %v622_v18  ;;  %v2524_v18 = vld [vmem:[#allocation66_spill] sm:$0xff] }
  0xfb   : > { %v632_v50 = vand.u32 2147483647, %v2523_v17  ;;  %v2526_v3 = vsub.f32 %v2524_v18, %v2525_v27  ;;  %v2528_v24 = vld [vmem:[#allocation94_spill] sm:$0xff] }
  0xfc   : > { %v750_v33 = vadd.f32 %v749_v6, %v623_v4  ;;  %v2527_v4 = vld [vmem:[#allocation67_spill] sm:$0xff]  ;;  %v2531_v6 = vld [vmem:[#allocation98_spill] sm:$0xff] }
  0xfd   : > { %v633_v19 = vand.u32 2147483647, %v2526_v3  ;;  %v2529_v39 = vsub.f32 %v2527_v4, %v2528_v24 }
  0xfe   : > { %v751_v34 = vadd.f32 %v750_v33, %v624_v37  ;;  %v2530_v37 = vld [vmem:[#allocation71_spill] sm:$0xff] }
  0xff   : > { %v634_v5 = vand.u32 2147483647, %v2529_v39  ;;  %v2532_v26 = vsub.f32 %v2530_v37, %v2531_v6  ;;  %v2534_v33 = vld [vmem:[#allocation99_spill] sm:$0xff] }
 0x100   : > { %v752_v35 = vadd.f32 %v751_v34, %v625_v7  ;;  %v2533_v7 = vld [vmem:[#allocation72_spill] sm:$0xff] }
 0x101   : > { %v635_v12 = vand.u32 2147483647, %v2532_v26  ;;  %v2535_v51 = vsub.f32 %v2533_v7, %v2534_v33  ;;  %v2537_v34 = vld [vmem:[#allocation100_spill] sm:$0xff] }
 0x102   : > { %v753_v42 = vadd.f32 %v752_v35, %v626_v8  ;;  %v2536_v8 = vld [vmem:[#allocation73_spill] sm:$0xff]  ;;  %v2540_v35 = vld [vmem:[#allocation104_spill] sm:$0xff] }
 0x103   : > { %v636_v60 = vand.u32 2147483647, %v2535_v51  ;;  %v2538_v55 = vsub.f32 %v2536_v8, %v2537_v34 }
 0x104   : > { %v754_v21 = vadd.f32 %v753_v42, %v627_v9  ;;  %v2539_v9 = vld [vmem:[#allocation77_spill] sm:$0xff] }
 0x105   : > { %v637_v56 = vand.u32 2147483647, %v2538_v55  ;;  %v2541_v49 = vsub.f32 %v2539_v9, %v2540_v35  ;;  %v2543_v42 = vld [vmem:[#allocation105_spill] sm:$0xff] }
 0x106   : > { %v755_v41 = vadd.f32 %v754_v21, %v628_v10  ;;  %v2542_v10 = vld [vmem:[#allocation78_spill] sm:$0xff] }
 0x107   : > { %v638_v14 = vand.u32 2147483647, %v2541_v49  ;;  %v2544_v31 = vsub.f32 %v2542_v10, %v2543_v42  ;;  %v2546_v21 = vld [vmem:[#allocation106_spill] sm:$0xff] }
 0x108   : > { %v756_v13 = vadd.f32 %v755_v41, %v629_v11  ;;  %v2545_v11 = vld [vmem:[#allocation79_spill] sm:$0xff]  ;;  %v2549_v41 = vld [vmem:[#allocation110_spill] sm:$0xff] }
 0x109   : > { %v639_v40 = vand.u32 2147483647, %v2544_v31  ;;  %v2547_v47 = vsub.f32 %v2545_v11, %v2546_v21 }
 0x10a   : > { %v757_v2 = vadd.f32 %v756_v13, %v630_v57  ;;  %v2548_v57 = vld [vmem:[#allocation83_spill] sm:$0xff] }
 0x10b   : > { %v640_v30 = vand.u32 2147483647, %v2547_v47  ;;  %v2550_v53 = vsub.f32 %v2548_v57, %v2549_v41  ;;  %v2552_v13 = vld [vmem:[#allocation111_spill] sm:$0xff] }
 0x10c   : > { %v758_v59 = vadd.f32 %v757_v2, %v631_v0  ;;  %v2551_v0 = vld [vmem:[#allocation84_spill] sm:$0xff] }
 0x10d   : > { %v641_v36 = vand.u32 2147483647, %v2550_v53  ;;  %v2553_v61 = vsub.f32 %v2551_v0, %v2552_v13  ;;  %v2555_v2 = vld [vmem:[#allocation112_spill] sm:$0xff] }
 0x10e   : > { %v759_v25 = vadd.f32 %v758_v59, %v632_v50  ;;  %v2554_v50 = vld [vmem:[#allocation85_spill] sm:$0xff]  ;;  %v2558_v59 = vld [vmem:[#allocation115_spill] sm:$0xff] }
 0x10f   : > { %v642_v1 = vand.u32 2147483647, %v2553_v61  ;;  %v2556_v18 = vsub.f32 %v2554_v50, %v2555_v2 }
 0x110   : > { %v760_v63 = vadd.f32 %v759_v25, %v633_v19  ;;  %v2557_v19 = vld [vmem:[#allocation89_spill] sm:$0xff]  ;;  %v2561_v25 = vld [vmem:[#allocation116_spill] sm:$0xff] }
 0x111   : > { %v643_v27 = vand.u32 2147483647, %v2556_v18  ;;  %v2559_v4 = vsub.f32 %v2557_v19, %v2558_v59 }
 0x112   : > { %v761_v48 = vadd.f32 %v760_v63, %v634_v5  ;;  %v2560_v5 = vld [vmem:[#allocation90_spill] sm:$0xff]  ;;  %v2564_v63 = vld [vmem:[#allocation117_spill] sm:$0xff] }
 0x113   : > { %v644_v24 = vand.u32 2147483647, %v2559_v4  ;;  %v2562_v37 = vsub.f32 %v2560_v5, %v2561_v25 }
 0x114   : > { %v762_v32 = vadd.f32 %v761_v48, %v635_v12  ;;  %v2563_v12 = vld [vmem:[#allocation91_spill] sm:$0xff]  ;;  %v2567_v48 = vld [vmem:[#allocation120_spill] sm:$0xff] }
 0x115   : > { %v645_v6 = vand.u32 2147483647, %v2562_v37  ;;  %v2565_v7 = vsub.f32 %v2563_v12, %v2564_v63 }
 0x116   : > { %v763_v16 = vadd.f32 %v762_v32, %v636_v60  ;;  %v2566_v60 = vld [vmem:[#allocation95_spill] sm:$0xff]  ;;  %v2570_v32 = vld [vmem:[#allocation121_spill] sm:$0xff] }
 0x117   : > { %v646_v33 = vand.u32 2147483647, %v2565_v7  ;;  %v2568_v8 = vsub.f32 %v2566_v60, %v2567_v48  ;;  %v2595_v7 = vld [vmem:[#allocation113_spill] sm:$0xff] }
 0x118   : > { %v764_v58 = vadd.f32 %v763_v16, %v637_v56  ;;  %v2569_v56 = vld [vmem:[#allocation96_spill] sm:$0xff]  ;;  %v2573_v16 = vld [vmem:[#allocation122_spill] sm:$0xff] }
 0x119   : > { %v647_v34 = vand.u32 2147483647, %v2568_v8  ;;  %v2571_v9 = vsub.f32 %v2569_v56, %v2570_v32  ;;  %v2598_v8 = vld [vmem:[#allocation114_spill] sm:$0xff] }
 0x11a   : > { %v765_v23 = vadd.f32 %v764_v58, %v638_v14  ;;  %v2572_v14 = vld [vmem:[#allocation97_spill] sm:$0xff]  ;;  %v2576_v58 = vld [vmem:[#allocation124_spill] sm:$0xff] }
 0x11b   : > { %v648_v35 = vand.u32 2147483647, %v2571_v9  ;;  %v2574_v10 = vsub.f32 %v2572_v14, %v2573_v16  ;;  %v2601_v9 = vsub.f32 %v1493_v28, %v1615_v44  ;;  %v2602_v14 = vld [vmem:[#allocation118_spill] sm:$0xff] }
 0x11c   : > { %v766_v62 = vadd.f32 %v765_v23, %v639_v40  ;;  %v2575_v40 = vld [vmem:[#allocation101_spill] sm:$0xff]  ;;  %v2603_v16 = vld [vmem:[#allocation138_spill] sm:$0xff] }
 0x11d   : > { %v649_v42 = vand.u32 2147483647, %v2574_v10  ;;  %v2577_v11 = vsub.f32 %v2575_v40, %v2576_v58  ;;  %v2579_v23 = vld [vmem:[#allocation125_spill] sm:$0xff]  ;;  %v2606_v40 = vld [vmem:[#allocation139_spill] sm:$0xff] }
 0x11e   : > { %v767_v17 = vadd.f32 %v766_v62, %v640_v30  ;;  %v2578_v30 = vld [vmem:[#allocation102_spill] sm:$0xff] }
 0x11f   : > { %v650_v21 = vand.u32 2147483647, %v2577_v11  ;;  %v2580_v57 = vsub.f32 %v2578_v30, %v2579_v23  ;;  %v2582_v62 = vld [vmem:[#allocation126_spill] sm:$0xff] }
 0x120   : > { %v768_v3 = vadd.f32 %v767_v17, %v641_v36  ;;  %v2581_v36 = vld [vmem:[#allocation103_spill] sm:$0xff]  ;;  %v2585_v17 = vld [vmem:[#allocation128_spill] sm:$0xff] }
 0x121   : > { %v651_v41 = vand.u32 2147483647, %v2580_v57  ;;  %v2583_v0 = vsub.f32 %v2581_v36, %v2582_v62  ;;  %v2609_v57 = vld [vmem:[#allocation143_spill] sm:$0xff]  ;;  %v2612_v36 = vld [vmem:[#allocation144_spill] sm:$0xff] }
 0x122   : > { %v769_v39 = vadd.f32 %v768_v3, %v642_v1  ;;  %v2584_v1 = vld [vmem:[#allocation107_spill] sm:$0xff]  ;;  %v2588_v3 = vld [vmem:[#allocation129_spill] sm:$0xff]  ;;  %v2610_v28 = vsub.f32 %v1526_v15, %v2609_v57  ;;  %v2645_v57 = vld [vmem:[#allocation156_spill] sm:$0xff] }
 0x123   : > { %v652_v13 = vand.u32 2147483647, %v2583_v0  ;;  %v2586_v50 = vsub.f32 %v2584_v1, %v2585_v17  ;;  %v2618_v15 = vld [vmem:[#allocation147_spill] sm:$0xff] }
 0x124   : > { %v770_v26 = vadd.f32 %v769_v39, %v643_v27  ;;  %v2587_v27 = vld [vmem:[#allocation108_spill] sm:$0xff]  ;;  %v2591_v39 = vld [vmem:[#allocation130_spill] sm:$0xff]  ;;  %v663_v44 = vand.u32 2147483647, %v2610_v28 }
 0x125   : > { %v653_v2 = vand.u32 2147483647, %v2586_v50  ;;  %v2589_v19 = vsub.f32 %v2587_v27, %v2588_v3 }
 0x126   : > { %v771_v51 = vadd.f32 %v770_v26, %v644_v24  ;;  %v2590_v24 = vld [vmem:[#allocation109_spill] sm:$0xff] }
 0x127   : > { %v654_v59 = vand.u32 2147483647, %v2589_v19  ;;  %v2592_v5 = vsub.f32 %v2590_v24, %v2591_v39 }
 0x128   : > { %v772_v55 = vadd.f32 %v771_v51, %v645_v6  ;;  %v2593_v6 = vld [vmem:[#allocation132_spill] sm:$0xff] }
 0x129   : > { %v655_v25 = vand.u32 2147483647, %v2592_v5  ;;  %v2594_v26 = vsub.f32 %v1463_v46, %v2593_v6  ;;  %v2604_v46 = vsub.f32 %v2602_v14, %v2603_v16 }
 0x12a   : > { %v773_v49 = vadd.f32 %v772_v55, %v646_v33  ;;  %v2596_v33 = vld [vmem:[#allocation133_spill] sm:$0xff] }
 0x12b   : > { %v656_v12 = vand.u32 2147483647, %v2594_v26  ;;  %v2597_v51 = vsub.f32 %v2595_v7, %v2596_v33  ;;  %v660_v10 = vand.u32 2147483647, %v2604_v46  ;;  %v2638_v46 = vld [vmem:[#allocation141_spill] sm:$0xff] }
 0x12c   : > { %v774_v31 = vadd.f32 %v773_v49, %v647_v34  ;;  %v2599_v34 = vld [vmem:[#allocation134_spill] sm:$0xff] }
 0x12d   : > { %v657_v60 = vand.u32 2147483647, %v2597_v51  ;;  %v2600_v55 = vsub.f32 %v2598_v8, %v2599_v34  ;;  %v2632_v34 = vld [vmem:[#allocation137_spill] sm:$0xff] }
 0x12e   : > { %v775_v47 = vadd.f32 %v774_v31, %v648_v35  ;;  %v659_v35 = vand.u32 2147483647, %v2601_v9  ;;  %v2605_v31 = vld [vmem:[#allocation119_spill] sm:$0xff]  ;;  %v2635_v9 = vld [vmem:[#allocation140_spill] sm:$0xff] }
 0x12f   : > { %v658_v56 = vand.u32 2147483647, %v2600_v55  ;;  %v2607_v58 = vsub.f32 %v2605_v31, %v2606_v40 }
 0x130   : > { %v776_v53 = vadd.f32 %v775_v47, %v649_v42  ;;  %v2608_v47 = vsub.f32 %v1523_v22, %v1641_v43  ;;  %v2615_v22 = vld [vmem:[#allocation146_spill] sm:$0xff] }
 0x131   : > { %v661_v11 = vand.u32 2147483647, %v2607_v58  ;;  %v2616_v43 = vsub.f32 %v1553_v45, %v2615_v22  ;;  %v2624_v45 = vld [vmem:[#allocation149_spill] sm:$0xff]  ;;  %v2641_v58 = vld [vmem:[#allocation142_spill] sm:$0xff] }
 0x132   : > { %v777_v61 = vadd.f32 %v776_v53, %v650_v21  ;;  %v662_v30 = vand.u32 2147483647, %v2608_v47  ;;  %v2611_v53 = vld [vmem:[#allocation123_spill] sm:$0xff] }
 0x133   : > { %v2613_v62 = vsub.f32 %v2611_v53, %v2612_v36  ;;  %v666_v50 = vand.u32 2147483647, %v2616_v43 }
 0x134   : > { %v778_v18 = vadd.f32 %v777_v61, %v651_v41  ;;  %v2614_v61 = vsub.f32 %v1550_v54, %v1661_v38  ;;  %v2621_v38 = vld [vmem:[#allocation148_spill] sm:$0xff] }
 0x135   : > { %v664_v0 = vand.u32 2147483647, %v2613_v62  ;;  %v2622_v54 = vsub.f32 %v1577_v29, %v2621_v38  ;;  %v2633_v29 = vld [vmem:[#allocation152_spill] sm:$0xff] }
 0x136   : > { %v779_v4 = vadd.f32 %v778_v18, %v652_v13  ;;  %v665_v1 = vand.u32 2147483647, %v2614_v61  ;;  %v2617_v18 = vld [vmem:[#allocation127_spill] sm:$0xff]  ;;  %v2634_v55 = vsub.f32 %v2632_v34, %v2633_v29 }
 0x137   : > { %v2619_v27 = vsub.f32 %v2617_v18, %v2618_v15  ;;  %v669_v39 = vand.u32 2147483647, %v2622_v54 }
 0x138   : > { %v780_v37 = vadd.f32 %v779_v4, %v653_v2 }
 0x139   : > { %v667_v3 = vand.u32 2147483647, %v2619_v27 }
 0x13a   : > { %v781_v63 = vadd.f32 %v780_v37, %v654_v59  ;;  %v2620_v59 = vsub.f32 %v1574_v20, %v1680_v52  ;;  %v2630_v20 = vld [vmem:[#allocation151_spill] sm:$0xff] }
 0x13c   : > { %v782_v48 = vadd.f32 %v781_v63, %v655_v25  ;;  %v668_v4 = vand.u32 2147483647, %v2620_v59  ;;  %v2623_v25 = vld [vmem:[#allocation131_spill] sm:$0xff]  ;;  %v2627_v63 = vld [vmem:[#allocation150_spill] sm:$0xff] }
 0x13d   : > { %v2625_v37 = vsub.f32 %v2623_v25, %v2624_v45 }
 0x13e   : > { %v783_v32 = vadd.f32 %v782_v48, %v656_v12  ;;  %v2626_v12 = vld [vmem:[#allocation135_spill] sm:$0xff] }
 0x13f   : > { %v670_v6 = vand.u32 2147483647, %v2625_v37  ;;  %v2628_v7 = vsub.f32 %v2626_v12, %v2627_v63 }
 0x140   : > { %v784_v49 = vadd.f32 %v783_v32, %v657_v60  ;;  %v2629_v60 = vld [vmem:[#allocation136_spill] sm:$0xff] }
 0x141   : > { %v671_v33 = vand.u32 2147483647, %v2628_v7  ;;  %v2631_v52 = vsub.f32 %v2629_v60, %v2630_v20 }
 0x142   : > { %v785_v42 = vadd.f32 %v784_v49, %v658_v56  ;;  %v673_v56 = vand.u32 2147483647, %v2634_v55 }
 0x143   : > { %v672_v48 = vand.u32 2147483647, %v2631_v52 }
 0x144   : > { %v786_v21 = vadd.f32 %v785_v42, %v659_v35  ;;  %v2636_v35 = vld [vmem:[#allocation153_spill] sm:$0xff] }
 0x145   : > { %v2637_v49 = vsub.f32 %v2635_v9, %v2636_v35 }
 0x146   : > { %v787_v23 = vadd.f32 %v786_v21, %v660_v10  ;;  %v2639_v10 = vld [vmem:[#allocation154_spill] sm:$0xff] }
 0x147   : > { %v674_v14 = vand.u32 2147483647, %v2637_v49  ;;  %v2640_v42 = vsub.f32 %v2638_v46, %v2639_v10 }
 0x148   : > { %v788_v41 = vadd.f32 %v787_v23, %v661_v11  ;;  %v2642_v11 = vld [vmem:[#allocation155_spill] sm:$0xff]  ;;  %v2644_v23 = vld [vmem:[#allocation145_spill] sm:$0xff] }
 0x149   : > { %v675_v31 = vand.u32 2147483647, %v2640_v42  ;;  %v2643_v21 = vsub.f32 %v2641_v58, %v2642_v11  ;;  %v2646_v28 = vsub.f32 %v2644_v23, %v2645_v57 }
 0x14a   : > { %v789_v13 = vadd.f32 %v788_v41, %v662_v30 }
 0x14b   : > { %v676_v47 = vand.u32 2147483647, %v2643_v21 }
 0x14c   : > { %v790_v17 = vadd.f32 %v789_v13, %v663_v44  ;;  %v677_v44 = vand.u32 2147483647, %v2646_v28 }
 0x14e   : > { %v791_v2 = vadd.f32 %v790_v17, %v664_v0 }
 0x150   : > { %v792_v19 = vadd.f32 %v791_v2, %v665_v1 }
 0x152   : > { %v793_v24 = vadd.f32 %v792_v19, %v666_v50 }
 0x154   : > { %v794_v5 = vadd.f32 %v793_v24, %v667_v3 }
 0x156   : > { %v795_v26 = vadd.f32 %v794_v5, %v668_v4 }
 0x158   : > { %v796_v51 = vadd.f32 %v795_v26, %v669_v39 }
 0x15a   : > { %v797_v8 = vadd.f32 %v796_v51, %v670_v6 }
 0x15c   : > { %v798_v32 = vadd.f32 %v797_v8, %v671_v33 }
 0x15e   : > { %v799_v16 = vadd.f32 %v798_v32, %v672_v48 }
 0x160   : > { %v800_v40 = vadd.f32 %v799_v16, %v673_v56 }
 0x162   : > { %v801_v30 = vadd.f32 %v800_v40, %v674_v14 }
 0x164   : > { %v802_v41 = vadd.f32 %v801_v30, %v675_v31 }
 0x166   : > { %v803_v53 = vadd.f32 %v802_v41, %v676_v47 }
 0x168   : > { %v804_v36 = vadd.f32 %v803_v53, %v677_v44 }
 0x16a   : > { %805 = vst [vmem:[%s165_s22] sm:$0xff] %v804_v36 }
 0x16b PF: > { %s12_s9 = sadd.s32 1, %s897_s9  }
 0x16c   : > { %p9_p5 = scmp.ge.s32.totalorder %s12_s9, 6  }
 0x16e   :  { %11 = sbr.rel (!%p9_p5) target bundleno = 1 (0x1), region = 61 }

</bundles_post_ra>
